<compile_context>
chip_gen: v5e
topology: v5e:2x2
jax: 0.10.0
libtpu: 0.0.40
codegen_flags: <defaults>
</compile_context>

<pallas_src>
import functools

import jax
import jax.numpy as jnp
from jax import lax
from jax.experimental import pallas as pl
from jax.experimental.pallas import tpu as pltpu
import numpy as np


# ----- hyper-parameters (the `hp` object in the original code) --------------
class hp:
    hidden_size = 32
    recurrent_layers = 2


STATE_DIM = 4
SEQ_LEN = 8
BATCH = 2


# ----- kernel ----------------------------------------------------------------
def critic_kernel(
    x_ref,                                  # (T*B, state_dim)  time-major flattened
    w_ih0_t, w_hh0_t, b0,                   # LSTM layer 0 (pre-transposed, biases summed)
    w_ih1_t, w_hh1_t, b1,                   # LSTM layer 1
    w_hid_t, b_hid,                         # Linear(hidden, hidden)
    w_val_t, b_val,                         # Linear(hidden, 1)
    out_ref,                                # (B, 1)
    *, seq, batch, H,
):
    B = batch

    def lstm_layer(pre, w_hh_t, collect):
        # pre: (seq*B, 4H) — input projection + bias already folded in.
        # Recurrence body only has the h @ W_hh^T matmul on the serial path.
        h = jnp.zeros((B, H), jnp.float32)
        c = jnp.zeros((B, H), jnp.float32)
        outs = []
        for t in range(seq):                       # static unroll (seq is compile-time)
            gates = pre[t * B:(t + 1) * B, :] + jnp.dot(
                h, w_hh_t, preferred_element_type=jnp.float32)      # (B, 4H)
            sig = jax.nn.sigmoid(gates)            # one full-vreg EUP op
            th = jnp.tanh(gates)                   # one full-vreg EUP op
            i = sig[:, 0 * H:1 * H]
            f = sig[:, 1 * H:2 * H]
            g = th[:, 2 * H:3 * H]
            o = sig[:, 3 * H:4 * H]
            c = f * c + i * g
            h = o * jnp.tanh(c)
            if collect:
                outs.append(h)
        return h, outs

    # ---- layer 0: whole-sequence input projection hoisted out of the loop ----
    pre0 = jnp.dot(x_ref[...], w_ih0_t[...],
                   preferred_element_type=jnp.float32) + b0[...]     # (T*B, 4H)
    _, seq0 = lstm_layer(pre0, w_hh0_t[...], collect=True)

    # ---- layer 1: hoisted input projection over the layer-0 output sequence ----
    seq0_all = jnp.concatenate(seq0, axis=0)                          # (T*B, H)
    pre1 = jnp.dot(seq0_all, w_ih1_t[...],
                   preferred_element_type=jnp.float32) + b1[...]      # (T*B, 4H)
    h1, _ = lstm_layer(pre1, w_hh1_t[...], collect=False)

    # ---- value head on last-layer final hidden state ----
    hid = jnp.dot(h1, w_hid_t[...],
                  preferred_element_type=jnp.float32) + b_hid[...]    # (B, H)
    # ELU(alpha=1); clamp exp argument so the unselected branch can't overflow.
    hid = jnp.where(hid > 0, hid, jnp.exp(jnp.minimum(hid, 0.0)) - 1.0)
    val = jnp.dot(hid, w_val_t[...],
                  preferred_element_type=jnp.float32) + b_val[...]    # (B, 1)
    out_ref[...] = val.astype(out_ref.dtype)


# ----- wrapper ----------------------------------------------------------------
def critic_forward(state, params, terminal=None):
    """state: (T, B, state_dim) float32 -> value: (B, 1) float32."""
    del terminal  # fresh zero hidden state -> terminal masking is a no-op
    T, B, D = state.shape
    H = hp.hidden_size

    # Wrapper-side layout plumbing: flatten time-major sequence for the hoisted
    # input GEMM and pre-transpose all weights so the kernel does x @ W_t.
    x_flat = state.reshape(T * B, D)
    inputs = (
        x_flat,
        params["w_ih0"].T, params["w_hh0"].T, (params["b_ih0"] + params["b_hh0"])[None, :],
        params["w_ih1"].T, params["w_hh1"].T, (params["b_ih1"] + params["b_hh1"])[None, :],
        params["w_hid"].T, params["b_hid"][None, :],
        params["w_val"].T, params["b_val"][None, :],
    )

    # Total footprint is a few tens of KB -> keep everything whole-array in
    # VMEM, no grid / BlockSpec pipelining (the kernel is recurrence-latency
    # bound, not VMEM/BW bound, on v5e/v6e/v7x alike).
    vmem = pl.BlockSpec(memory_space=pltpu.MemorySpace.VMEM)
    return pl.pallas_call(
        functools.partial(critic_kernel, seq=T, batch=B, H=H),
        out_shape=jax.ShapeDtypeStruct((B, 1), jnp.float32),
        in_specs=[vmem] * len(inputs),
        out_specs=vmem,
    )(*inputs)


# ----- deterministic parameter init (PyTorch-style uniform) -------------------
def init_params(key, state_dim, H):
    k = 1.0 / np.sqrt(H)

    def u(key, shape, bound):
        return jax.random.uniform(key, shape, jnp.float32, -bound, bound)

    keys = jax.random.split(key, 14)
    return {
        # LSTM layer 0 (gate order: i, f, g, o)
        "w_ih0": u(keys[0], (4 * H, state_dim), k),
        "w_hh0": u(keys[1], (4 * H, H), k),
        "b_ih0": u(keys[2], (4 * H,), k),
        "b_hh0": u(keys[3], (4 * H,), k),
        # LSTM layer 1
        "w_ih1": u(keys[4], (4 * H, H), k),
        "w_hh1": u(keys[5], (4 * H, H), k),
        "b_ih1": u(keys[6], (4 * H,), k),
        "b_hh1": u(keys[7], (4 * H,), k),
        # layer_hidden
        "w_hid": u(keys[8], (H, H), k),
        "b_hid": u(keys[9], (H,), k),
        # layer_value
        "w_val": u(keys[10], (1, H), k),
        "b_val": u(keys[11], (1,), k),
    }


# ----- pure-JAX reference ------------------------------------------------------
def critic_reference(state, params):
    H = hp.hidden_size

    def run_layer(xs, w_ih, w_hh, b):
        def step(carry, x_t):
            h, c = carry
            gates = x_t @ w_ih.T + h @ w_hh.T + b
            i = jax.nn.sigmoid(gates[:, 0 * H:1 * H])
            f = jax.nn.sigmoid(gates[:, 1 * H:2 * H])
            g = jnp.tanh(gates[:, 2 * H:3 * H])
            o = jax.nn.sigmoid(gates[:, 3 * H:4 * H])
            c = f * c + i * g
            h = o * jnp.tanh(c)
            return (h, c), h

        B = xs.shape[1]
        (h, _), seq = lax.scan(step, (jnp.zeros((B, H)), jnp.zeros((B, H))), xs)
        return seq, h

    seq0, _ = run_layer(state, params["w_ih0"], params["w_hh0"],
                        params["b_ih0"] + params["b_hh0"])
    _, h1 = run_layer(seq0, params["w_ih1"], params["w_hh1"],
                      params["b_ih1"] + params["b_hh1"])
    hid = h1 @ params["w_hid"].T + params["b_hid"]
    hid = jnp.where(hid > 0, hid, jnp.exp(hid) - 1.0)
    return hid @ params["w_val"].T + params["b_val"]


# ----- main --------------------------------------------------------------------
if __name__ == "__main__":
    key = jax.random.PRNGKey(0)
    k_state, k_params = jax.random.split(key)

    state = jax.random.normal(k_state, (SEQ_LEN, BATCH, STATE_DIM), jnp.float32)
    params = init_params(k_params, STATE_DIM, hp.hidden_size)

    value = critic_forward(state, params)
    value = jax.block_until_ready(value)

    ref = jax.block_until_ready(critic_reference(state, params))
    np.testing.assert_allclose(np.asarray(value), np.asarray(ref),
                               atol=2e-3, rtol=2e-3)
    assert value.shape == (BATCH, 1)
    print("KERNEL_OK")
</pallas_src>

<mosaic_0001>
module attributes {stable_mosaic.version = 11 : i64} {
  func.func @critic_kernel(%arg0: memref<16x4xf32, #tpu.memory_space<vmem>>, %arg1: memref<4x128xf32, #tpu.memory_space<vmem>>, %arg2: memref<32x128xf32, #tpu.memory_space<vmem>>, %arg3: memref<1x128xf32, #tpu.memory_space<vmem>>, %arg4: memref<32x128xf32, #tpu.memory_space<vmem>>, %arg5: memref<32x128xf32, #tpu.memory_space<vmem>>, %arg6: memref<1x128xf32, #tpu.memory_space<vmem>>, %arg7: memref<32x32xf32, #tpu.memory_space<vmem>>, %arg8: memref<1x32xf32, #tpu.memory_space<vmem>>, %arg9: memref<32x1xf32, #tpu.memory_space<vmem>>, %arg10: memref<1x1xf32, #tpu.memory_space<vmem>>, %arg11: memref<2x1xf32, #tpu.memory_space<vmem>>) attributes {dimension_semantics = [], scalar_prefetch = 0 : i64, scratch_operands = 0 : i64, tpu.core_type = #tpu.core_type<tc>} {
    %c0 = arith.constant 0 : index
    %c0_0 = arith.constant 0 : index
    %0 = vector.load %arg0[%c0, %c0_0] : memref<16x4xf32, #tpu.memory_space<vmem>>, vector<16x4xf32>
    %c0_1 = arith.constant 0 : index
    %c0_2 = arith.constant 0 : index
    %1 = vector.load %arg1[%c0_1, %c0_2] : memref<4x128xf32, #tpu.memory_space<vmem>>, vector<4x128xf32>
    %cst = arith.constant dense<0.000000e+00> : vector<16x128xf32>
    %2 = tpu.matmul %0, %1, %cst {dimension_numbers = #tpu.dot_dimension_numbers<[1], [0], [0], [1], [0, 0, 1, 1], [], []>} : vector<16x4xf32>, vector<4x128xf32>, vector<16x128xf32> -> vector<16x128xf32>
    %c0_3 = arith.constant 0 : index
    %c0_4 = arith.constant 0 : index
    %3 = vector.load %arg3[%c0_3, %c0_4] : memref<1x128xf32, #tpu.memory_space<vmem>>, vector<1x128xf32>
    %4 = vector.broadcast %3 : vector<1x128xf32> to vector<16x128xf32>
    %5 = arith.addf %2, %4 : vector<16x128xf32>
    %c0_5 = arith.constant 0 : index
    %c0_6 = arith.constant 0 : index
    %6 = vector.load %arg2[%c0_5, %c0_6] : memref<32x128xf32, #tpu.memory_space<vmem>>, vector<32x128xf32>
    %cst_7 = arith.constant 0.000000e+00 : f32
    %7 = vector.broadcast %cst_7 : f32 to vector<2x32xf32>
    %cst_8 = arith.constant 0.000000e+00 : f32
    %8 = vector.broadcast %cst_8 : f32 to vector<2x32xf32>
    %9 = vector.extract_strided_slice %5 {offsets = [0, 0], sizes = [2, 128], strides = [1, 1]} : vector<16x128xf32> to vector<2x128xf32>
    %cst_9 = arith.constant dense<0.000000e+00> : vector<2x128xf32>
    %10 = tpu.matmul %7, %6, %cst_9 {dimension_numbers = #tpu.dot_dimension_numbers<[1], [0], [0], [1], [0, 0, 1, 1], [], []>} : vector<2x32xf32>, vector<32x128xf32>, vector<2x128xf32> -> vector<2x128xf32>
    %11 = arith.addf %9, %10 : vector<2x128xf32>
    %12 = arith.negf %11 : vector<2x128xf32>
    %13 = math.exp %12 : vector<2x128xf32>
    %cst_10 = arith.constant 1.000000e+00 : f32
    %14 = vector.broadcast %cst_10 : f32 to vector<2x128xf32>
    %15 = arith.addf %14, %13 : vector<2x128xf32>
    %16 = arith.divf %14, %15 : vector<2x128xf32>
    %17 = math.tanh %11 : vector<2x128xf32>
    %18 = vector.extract_strided_slice %16 {offsets = [0, 0], sizes = [2, 32], strides = [1, 1]} : vector<2x128xf32> to vector<2x32xf32>
    %19 = vector.extract_strided_slice %16 {offsets = [0, 32], sizes = [2, 32], strides = [1, 1]} : vector<2x128xf32> to vector<2x32xf32>
    %20 = vector.extract_strided_slice %17 {offsets = [0, 64], sizes = [2, 32], strides = [1, 1]} : vector<2x128xf32> to vector<2x32xf32>
    %21 = vector.extract_strided_slice %16 {offsets = [0, 96], sizes = [2, 32], strides = [1, 1]} : vector<2x128xf32> to vector<2x32xf32>
    %22 = arith.mulf %19, %8 : vector<2x32xf32>
    %23 = arith.mulf %18, %20 : vector<2x32xf32>
    %24 = arith.addf %22, %23 : vector<2x32xf32>
    %25 = math.tanh %24 : vector<2x32xf32>
    %26 = arith.mulf %21, %25 : vector<2x32xf32>
    %27 = vector.extract_strided_slice %5 {offsets = [2, 0], sizes = [2, 128], strides = [1, 1]} : vector<16x128xf32> to vector<2x128xf32>
    %cst_11 = arith.constant dense<0.000000e+00> : vector<2x128xf32>
    %28 = tpu.matmul %26, %6, %cst_11 {dimension_numbers = #tpu.dot_dimension_numbers<[1], [0], [0], [1], [0, 0, 1, 1], [], []>} : vector<2x32xf32>, vector<32x128xf32>, vector<2x128xf32> -> vector<2x128xf32>
    %29 = arith.addf %27, %28 : vector<2x128xf32>
    %30 = arith.negf %29 : vector<2x128xf32>
    %31 = math.exp %30 : vector<2x128xf32>
    %cst_12 = arith.constant 1.000000e+00 : f32
    %32 = vector.broadcast %cst_12 : f32 to vector<2x128xf32>
    %33 = arith.addf %32, %31 : vector<2x128xf32>
    %34 = arith.divf %32, %33 : vector<2x128xf32>
    %35 = math.tanh %29 : vector<2x128xf32>
    %36 = vector.extract_strided_slice %34 {offsets = [0, 0], sizes = [2, 32], strides = [1, 1]} : vector<2x128xf32> to vector<2x32xf32>
    %37 = vector.extract_strided_slice %34 {offsets = [0, 32], sizes = [2, 32], strides = [1, 1]} : vector<2x128xf32> to vector<2x32xf32>
    %38 = vector.extract_strided_slice %35 {offsets = [0, 64], sizes = [2, 32], strides = [1, 1]} : vector<2x128xf32> to vector<2x32xf32>
    %39 = vector.extract_strided_slice %34 {offsets = [0, 96], sizes = [2, 32], strides = [1, 1]} : vector<2x128xf32> to vector<2x32xf32>
    %40 = arith.mulf %37, %24 : vector<2x32xf32>
    %41 = arith.mulf %36, %38 : vector<2x32xf32>
    %42 = arith.addf %40, %41 : vector<2x32xf32>
    %43 = math.tanh %42 : vector<2x32xf32>
    %44 = arith.mulf %39, %43 : vector<2x32xf32>
    %45 = vector.extract_strided_slice %5 {offsets = [4, 0], sizes = [2, 128], strides = [1, 1]} : vector<16x128xf32> to vector<2x128xf32>
    %cst_13 = arith.constant dense<0.000000e+00> : vector<2x128xf32>
    %46 = tpu.matmul %44, %6, %cst_13 {dimension_numbers = #tpu.dot_dimension_numbers<[1], [0], [0], [1], [0, 0, 1, 1], [], []>} : vector<2x32xf32>, vector<32x128xf32>, vector<2x128xf32> -> vector<2x128xf32>
    %47 = arith.addf %45, %46 : vector<2x128xf32>
    %48 = arith.negf %47 : vector<2x128xf32>
    %49 = math.exp %48 : vector<2x128xf32>
    %cst_14 = arith.constant 1.000000e+00 : f32
    %50 = vector.broadcast %cst_14 : f32 to vector<2x128xf32>
    %51 = arith.addf %50, %49 : vector<2x128xf32>
    %52 = arith.divf %50, %51 : vector<2x128xf32>
    %53 = math.tanh %47 : vector<2x128xf32>
    %54 = vector.extract_strided_slice %52 {offsets = [0, 0], sizes = [2, 32], strides = [1, 1]} : vector<2x128xf32> to vector<2x32xf32>
    %55 = vector.extract_strided_slice %52 {offsets = [0, 32], sizes = [2, 32], strides = [1, 1]} : vector<2x128xf32> to vector<2x32xf32>
    %56 = vector.extract_strided_slice %53 {offsets = [0, 64], sizes = [2, 32], strides = [1, 1]} : vector<2x128xf32> to vector<2x32xf32>
    %57 = vector.extract_strided_slice %52 {offsets = [0, 96], sizes = [2, 32], strides = [1, 1]} : vector<2x128xf32> to vector<2x32xf32>
    %58 = arith.mulf %55, %42 : vector<2x32xf32>
    %59 = arith.mulf %54, %56 : vector<2x32xf32>
    %60 = arith.addf %58, %59 : vector<2x32xf32>
    %61 = math.tanh %60 : vector<2x32xf32>
    %62 = arith.mulf %57, %61 : vector<2x32xf32>
    %63 = vector.extract_strided_slice %5 {offsets = [6, 0], sizes = [2, 128], strides = [1, 1]} : vector<16x128xf32> to vector<2x128xf32>
    %cst_15 = arith.constant dense<0.000000e+00> : vector<2x128xf32>
    %64 = tpu.matmul %62, %6, %cst_15 {dimension_numbers = #tpu.dot_dimension_numbers<[1], [0], [0], [1], [0, 0, 1, 1], [], []>} : vector<2x32xf32>, vector<32x128xf32>, vector<2x128xf32> -> vector<2x128xf32>
    %65 = arith.addf %63, %64 : vector<2x128xf32>
    %66 = arith.negf %65 : vector<2x128xf32>
    %67 = math.exp %66 : vector<2x128xf32>
    %cst_16 = arith.constant 1.000000e+00 : f32
    %68 = vector.broadcast %cst_16 : f32 to vector<2x128xf32>
    %69 = arith.addf %68, %67 : vector<2x128xf32>
    %70 = arith.divf %68, %69 : vector<2x128xf32>
    %71 = math.tanh %65 : vector<2x128xf32>
    %72 = vector.extract_strided_slice %70 {offsets = [0, 0], sizes = [2, 32], strides = [1, 1]} : vector<2x128xf32> to vector<2x32xf32>
    %73 = vector.extract_strided_slice %70 {offsets = [0, 32], sizes = [2, 32], strides = [1, 1]} : vector<2x128xf32> to vector<2x32xf32>
    %74 = vector.extract_strided_slice %71 {offsets = [0, 64], sizes = [2, 32], strides = [1, 1]} : vector<2x128xf32> to vector<2x32xf32>
    %75 = vector.extract_strided_slice %70 {offsets = [0, 96], sizes = [2, 32], strides = [1, 1]} : vector<2x128xf32> to vector<2x32xf32>
    %76 = arith.mulf %73, %60 : vector<2x32xf32>
    %77 = arith.mulf %72, %74 : vector<2x32xf32>
    %78 = arith.addf %76, %77 : vector<2x32xf32>
    %79 = math.tanh %78 : vector<2x32xf32>
    %80 = arith.mulf %75, %79 : vector<2x32xf32>
    %81 = vector.extract_strided_slice %5 {offsets = [8, 0], sizes = [2, 128], strides = [1, 1]} : vector<16x128xf32> to vector<2x128xf32>
    %cst_17 = arith.constant dense<0.000000e+00> : vector<2x128xf32>
    %82 = tpu.matmul %80, %6, %cst_17 {dimension_numbers = #tpu.dot_dimension_numbers<[1], [0], [0], [1], [0, 0, 1, 1], [], []>} : vector<2x32xf32>, vector<32x128xf32>, vector<2x128xf32> -> vector<2x128xf32>
    %83 = arith.addf %81, %82 : vector<2x128xf32>
    %84 = arith.negf %83 : vector<2x128xf32>
    %85 = math.exp %84 : vector<2x128xf32>
    %cst_18 = arith.constant 1.000000e+00 : f32
    %86 = vector.broadcast %cst_18 : f32 to vector<2x128xf32>
    %87 = arith.addf %86, %85 : vector<2x128xf32>
    %88 = arith.divf %86, %87 : vector<2x128xf32>
    %89 = math.tanh %83 : vector<2x128xf32>
    %90 = vector.extract_strided_slice %88 {offsets = [0, 0], sizes = [2, 32], strides = [1, 1]} : vector<2x128xf32> to vector<2x32xf32>
    %91 = vector.extract_strided_slice %88 {offsets = [0, 32], sizes = [2, 32], strides = [1, 1]} : vector<2x128xf32> to vector<2x32xf32>
    %92 = vector.extract_strided_slice %89 {offsets = [0, 64], sizes = [2, 32], strides = [1, 1]} : vector<2x128xf32> to vector<2x32xf32>
    %93 = vector.extract_strided_slice %88 {offsets = [0, 96], sizes = [2, 32], strides = [1, 1]} : vector<2x128xf32> to vector<2x32xf32>
    %94 = arith.mulf %91, %78 : vector<2x32xf32>
    %95 = arith.mulf %90, %92 : vector<2x32xf32>
    %96 = arith.addf %94, %95 : vector<2x32xf32>
    %97 = math.tanh %96 : vector<2x32xf32>
    %98 = arith.mulf %93, %97 : vector<2x32xf32>
    %99 = vector.extract_strided_slice %5 {offsets = [10, 0], sizes = [2, 128], strides = [1, 1]} : vector<16x128xf32> to vector<2x128xf32>
    %cst_19 = arith.constant dense<0.000000e+00> : vector<2x128xf32>
    %100 = tpu.matmul %98, %6, %cst_19 {dimension_numbers = #tpu.dot_dimension_numbers<[1], [0], [0], [1], [0, 0, 1, 1], [], []>} : vector<2x32xf32>, vector<32x128xf32>, vector<2x128xf32> -> vector<2x128xf32>
    %101 = arith.addf %99, %100 : vector<2x128xf32>
    %102 = arith.negf %101 : vector<2x128xf32>
    %103 = math.exp %102 : vector<2x128xf32>
    %cst_20 = arith.constant 1.000000e+00 : f32
    %104 = vector.broadcast %cst_20 : f32 to vector<2x128xf32>
    %105 = arith.addf %104, %103 : vector<2x128xf32>
    %106 = arith.divf %104, %105 : vector<2x128xf32>
    %107 = math.tanh %101 : vector<2x128xf32>
    %108 = vector.extract_strided_slice %106 {offsets = [0, 0], sizes = [2, 32], strides = [1, 1]} : vector<2x128xf32> to vector<2x32xf32>
    %109 = vector.extract_strided_slice %106 {offsets = [0, 32], sizes = [2, 32], strides = [1, 1]} : vector<2x128xf32> to vector<2x32xf32>
    %110 = vector.extract_strided_slice %107 {offsets = [0, 64], sizes = [2, 32], strides = [1, 1]} : vector<2x128xf32> to vector<2x32xf32>
    %111 = vector.extract_strided_slice %106 {offsets = [0, 96], sizes = [2, 32], strides = [1, 1]} : vector<2x128xf32> to vector<2x32xf32>
    %112 = arith.mulf %109, %96 : vector<2x32xf32>
    %113 = arith.mulf %108, %110 : vector<2x32xf32>
    %114 = arith.addf %112, %113 : vector<2x32xf32>
    %115 = math.tanh %114 : vector<2x32xf32>
    %116 = arith.mulf %111, %115 : vector<2x32xf32>
    %117 = vector.extract_strided_slice %5 {offsets = [12, 0], sizes = [2, 128], strides = [1, 1]} : vector<16x128xf32> to vector<2x128xf32>
    %cst_21 = arith.constant dense<0.000000e+00> : vector<2x128xf32>
    %118 = tpu.matmul %116, %6, %cst_21 {dimension_numbers = #tpu.dot_dimension_numbers<[1], [0], [0], [1], [0, 0, 1, 1], [], []>} : vector<2x32xf32>, vector<32x128xf32>, vector<2x128xf32> -> vector<2x128xf32>
    %119 = arith.addf %117, %118 : vector<2x128xf32>
    %120 = arith.negf %119 : vector<2x128xf32>
    %121 = math.exp %120 : vector<2x128xf32>
    %cst_22 = arith.constant 1.000000e+00 : f32
    %122 = vector.broadcast %cst_22 : f32 to vector<2x128xf32>
    %123 = arith.addf %122, %121 : vector<2x128xf32>
    %124 = arith.divf %122, %123 : vector<2x128xf32>
    %125 = math.tanh %119 : vector<2x128xf32>
    %126 = vector.extract_strided_slice %124 {offsets = [0, 0], sizes = [2, 32], strides = [1, 1]} : vector<2x128xf32> to vector<2x32xf32>
    %127 = vector.extract_strided_slice %124 {offsets = [0, 32], sizes = [2, 32], strides = [1, 1]} : vector<2x128xf32> to vector<2x32xf32>
    %128 = vector.extract_strided_slice %125 {offsets = [0, 64], sizes = [2, 32], strides = [1, 1]} : vector<2x128xf32> to vector<2x32xf32>
    %129 = vector.extract_strided_slice %124 {offsets = [0, 96], sizes = [2, 32], strides = [1, 1]} : vector<2x128xf32> to vector<2x32xf32>
    %130 = arith.mulf %127, %114 : vector<2x32xf32>
    %131 = arith.mulf %126, %128 : vector<2x32xf32>
    %132 = arith.addf %130, %131 : vector<2x32xf32>
    %133 = math.tanh %132 : vector<2x32xf32>
    %134 = arith.mulf %129, %133 : vector<2x32xf32>
    %135 = vector.extract_strided_slice %5 {offsets = [14, 0], sizes = [2, 128], strides = [1, 1]} : vector<16x128xf32> to vector<2x128xf32>
    %cst_23 = arith.constant dense<0.000000e+00> : vector<2x128xf32>
    %136 = tpu.matmul %134, %6, %cst_23 {dimension_numbers = #tpu.dot_dimension_numbers<[1], [0], [0], [1], [0, 0, 1, 1], [], []>} : vector<2x32xf32>, vector<32x128xf32>, vector<2x128xf32> -> vector<2x128xf32>
    %137 = arith.addf %135, %136 : vector<2x128xf32>
    %138 = arith.negf %137 : vector<2x128xf32>
    %139 = math.exp %138 : vector<2x128xf32>
    %cst_24 = arith.constant 1.000000e+00 : f32
    %140 = vector.broadcast %cst_24 : f32 to vector<2x128xf32>
    %141 = arith.addf %140, %139 : vector<2x128xf32>
    %142 = arith.divf %140, %141 : vector<2x128xf32>
    %143 = math.tanh %137 : vector<2x128xf32>
    %144 = vector.extract_strided_slice %142 {offsets = [0, 0], sizes = [2, 32], strides = [1, 1]} : vector<2x128xf32> to vector<2x32xf32>
    %145 = vector.extract_strided_slice %142 {offsets = [0, 32], sizes = [2, 32], strides = [1, 1]} : vector<2x128xf32> to vector<2x32xf32>
    %146 = vector.extract_strided_slice %143 {offsets = [0, 64], sizes = [2, 32], strides = [1, 1]} : vector<2x128xf32> to vector<2x32xf32>
    %147 = vector.extract_strided_slice %142 {offsets = [0, 96], sizes = [2, 32], strides = [1, 1]} : vector<2x128xf32> to vector<2x32xf32>
    %148 = arith.mulf %145, %132 : vector<2x32xf32>
    %149 = arith.mulf %144, %146 : vector<2x32xf32>
    %150 = arith.addf %148, %149 : vector<2x32xf32>
    %151 = math.tanh %150 : vector<2x32xf32>
    %152 = arith.mulf %147, %151 : vector<2x32xf32>
    %153 = tpu.concatenate %26, %44, %62, %80, %98, %116, %134, %152 in 0 : vector<2x32xf32>, vector<2x32xf32>, vector<2x32xf32>, vector<2x32xf32>, vector<2x32xf32>, vector<2x32xf32>, vector<2x32xf32>, vector<2x32xf32> -> vector<16x32xf32>
    %c0_25 = arith.constant 0 : index
    %c0_26 = arith.constant 0 : index
    %154 = vector.load %arg4[%c0_25, %c0_26] : memref<32x128xf32, #tpu.memory_space<vmem>>, vector<32x128xf32>
    %cst_27 = arith.constant dense<0.000000e+00> : vector<16x128xf32>
    %155 = tpu.matmul %153, %154, %cst_27 {dimension_numbers = #tpu.dot_dimension_numbers<[1], [0], [0], [1], [0, 0, 1, 1], [], []>} : vector<16x32xf32>, vector<32x128xf32>, vector<16x128xf32> -> vector<16x128xf32>
    %c0_28 = arith.constant 0 : index
    %c0_29 = arith.constant 0 : index
    %156 = vector.load %arg6[%c0_28, %c0_29] : memref<1x128xf32, #tpu.memory_space<vmem>>, vector<1x128xf32>
    %157 = vector.broadcast %156 : vector<1x128xf32> to vector<16x128xf32>
    %158 = arith.addf %155, %157 : vector<16x128xf32>
    %c0_30 = arith.constant 0 : index
    %c0_31 = arith.constant 0 : index
    %159 = vector.load %arg5[%c0_30, %c0_31] : memref<32x128xf32, #tpu.memory_space<vmem>>, vector<32x128xf32>
    %cst_32 = arith.constant 0.000000e+00 : f32
    %160 = vector.broadcast %cst_32 : f32 to vector<2x32xf32>
    %cst_33 = arith.constant 0.000000e+00 : f32
    %161 = vector.broadcast %cst_33 : f32 to vector<2x32xf32>
    %162 = vector.extract_strided_slice %158 {offsets = [0, 0], sizes = [2, 128], strides = [1, 1]} : vector<16x128xf32> to vector<2x128xf32>
    %cst_34 = arith.constant dense<0.000000e+00> : vector<2x128xf32>
    %163 = tpu.matmul %160, %159, %cst_34 {dimension_numbers = #tpu.dot_dimension_numbers<[1], [0], [0], [1], [0, 0, 1, 1], [], []>} : vector<2x32xf32>, vector<32x128xf32>, vector<2x128xf32> -> vector<2x128xf32>
    %164 = arith.addf %162, %163 : vector<2x128xf32>
    %165 = arith.negf %164 : vector<2x128xf32>
    %166 = math.exp %165 : vector<2x128xf32>
    %cst_35 = arith.constant 1.000000e+00 : f32
    %167 = vector.broadcast %cst_35 : f32 to vector<2x128xf32>
    %168 = arith.addf %167, %166 : vector<2x128xf32>
    %169 = arith.divf %167, %168 : vector<2x128xf32>
    %170 = math.tanh %164 : vector<2x128xf32>
    %171 = vector.extract_strided_slice %169 {offsets = [0, 0], sizes = [2, 32], strides = [1, 1]} : vector<2x128xf32> to vector<2x32xf32>
    %172 = vector.extract_strided_slice %169 {offsets = [0, 32], sizes = [2, 32], strides = [1, 1]} : vector<2x128xf32> to vector<2x32xf32>
    %173 = vector.extract_strided_slice %170 {offsets = [0, 64], sizes = [2, 32], strides = [1, 1]} : vector<2x128xf32> to vector<2x32xf32>
    %174 = vector.extract_strided_slice %169 {offsets = [0, 96], sizes = [2, 32], strides = [1, 1]} : vector<2x128xf32> to vector<2x32xf32>
    %175 = arith.mulf %172, %161 : vector<2x32xf32>
    %176 = arith.mulf %171, %173 : vector<2x32xf32>
    %177 = arith.addf %175, %176 : vector<2x32xf32>
    %178 = math.tanh %177 : vector<2x32xf32>
    %179 = arith.mulf %174, %178 : vector<2x32xf32>
    %180 = vector.extract_strided_slice %158 {offsets = [2, 0], sizes = [2, 128], strides = [1, 1]} : vector<16x128xf32> to vector<2x128xf32>
    %cst_36 = arith.constant dense<0.000000e+00> : vector<2x128xf32>
    %181 = tpu.matmul %179, %159, %cst_36 {dimension_numbers = #tpu.dot_dimension_numbers<[1], [0], [0], [1], [0, 0, 1, 1], [], []>} : vector<2x32xf32>, vector<32x128xf32>, vector<2x128xf32> -> vector<2x128xf32>
    %182 = arith.addf %180, %181 : vector<2x128xf32>
    %183 = arith.negf %182 : vector<2x128xf32>
    %184 = math.exp %183 : vector<2x128xf32>
    %cst_37 = arith.constant 1.000000e+00 : f32
    %185 = vector.broadcast %cst_37 : f32 to vector<2x128xf32>
    %186 = arith.addf %185, %184 : vector<2x128xf32>
    %187 = arith.divf %185, %186 : vector<2x128xf32>
    %188 = math.tanh %182 : vector<2x128xf32>
    %189 = vector.extract_strided_slice %187 {offsets = [0, 0], sizes = [2, 32], strides = [1, 1]} : vector<2x128xf32> to vector<2x32xf32>
    %190 = vector.extract_strided_slice %187 {offsets = [0, 32], sizes = [2, 32], strides = [1, 1]} : vector<2x128xf32> to vector<2x32xf32>
    %191 = vector.extract_strided_slice %188 {offsets = [0, 64], sizes = [2, 32], strides = [1, 1]} : vector<2x128xf32> to vector<2x32xf32>
    %192 = vector.extract_strided_slice %187 {offsets = [0, 96], sizes = [2, 32], strides = [1, 1]} : vector<2x128xf32> to vector<2x32xf32>
    %193 = arith.mulf %190, %177 : vector<2x32xf32>
    %194 = arith.mulf %189, %191 : vector<2x32xf32>
    %195 = arith.addf %193, %194 : vector<2x32xf32>
    %196 = math.tanh %195 : vector<2x32xf32>
    %197 = arith.mulf %192, %196 : vector<2x32xf32>
    %198 = vector.extract_strided_slice %158 {offsets = [4, 0], sizes = [2, 128], strides = [1, 1]} : vector<16x128xf32> to vector<2x128xf32>
    %cst_38 = arith.constant dense<0.000000e+00> : vector<2x128xf32>
    %199 = tpu.matmul %197, %159, %cst_38 {dimension_numbers = #tpu.dot_dimension_numbers<[1], [0], [0], [1], [0, 0, 1, 1], [], []>} : vector<2x32xf32>, vector<32x128xf32>, vector<2x128xf32> -> vector<2x128xf32>
    %200 = arith.addf %198, %199 : vector<2x128xf32>
    %201 = arith.negf %200 : vector<2x128xf32>
    %202 = math.exp %201 : vector<2x128xf32>
    %cst_39 = arith.constant 1.000000e+00 : f32
    %203 = vector.broadcast %cst_39 : f32 to vector<2x128xf32>
    %204 = arith.addf %203, %202 : vector<2x128xf32>
    %205 = arith.divf %203, %204 : vector<2x128xf32>
    %206 = math.tanh %200 : vector<2x128xf32>
    %207 = vector.extract_strided_slice %205 {offsets = [0, 0], sizes = [2, 32], strides = [1, 1]} : vector<2x128xf32> to vector<2x32xf32>
    %208 = vector.extract_strided_slice %205 {offsets = [0, 32], sizes = [2, 32], strides = [1, 1]} : vector<2x128xf32> to vector<2x32xf32>
    %209 = vector.extract_strided_slice %206 {offsets = [0, 64], sizes = [2, 32], strides = [1, 1]} : vector<2x128xf32> to vector<2x32xf32>
    %210 = vector.extract_strided_slice %205 {offsets = [0, 96], sizes = [2, 32], strides = [1, 1]} : vector<2x128xf32> to vector<2x32xf32>
    %211 = arith.mulf %208, %195 : vector<2x32xf32>
    %212 = arith.mulf %207, %209 : vector<2x32xf32>
    %213 = arith.addf %211, %212 : vector<2x32xf32>
    %214 = math.tanh %213 : vector<2x32xf32>
    %215 = arith.mulf %210, %214 : vector<2x32xf32>
    %216 = vector.extract_strided_slice %158 {offsets = [6, 0], sizes = [2, 128], strides = [1, 1]} : vector<16x128xf32> to vector<2x128xf32>
    %cst_40 = arith.constant dense<0.000000e+00> : vector<2x128xf32>
    %217 = tpu.matmul %215, %159, %cst_40 {dimension_numbers = #tpu.dot_dimension_numbers<[1], [0], [0], [1], [0, 0, 1, 1], [], []>} : vector<2x32xf32>, vector<32x128xf32>, vector<2x128xf32> -> vector<2x128xf32>
    %218 = arith.addf %216, %217 : vector<2x128xf32>
    %219 = arith.negf %218 : vector<2x128xf32>
    %220 = math.exp %219 : vector<2x128xf32>
    %cst_41 = arith.constant 1.000000e+00 : f32
    %221 = vector.broadcast %cst_41 : f32 to vector<2x128xf32>
    %222 = arith.addf %221, %220 : vector<2x128xf32>
    %223 = arith.divf %221, %222 : vector<2x128xf32>
    %224 = math.tanh %218 : vector<2x128xf32>
    %225 = vector.extract_strided_slice %223 {offsets = [0, 0], sizes = [2, 32], strides = [1, 1]} : vector<2x128xf32> to vector<2x32xf32>
    %226 = vector.extract_strided_slice %223 {offsets = [0, 32], sizes = [2, 32], strides = [1, 1]} : vector<2x128xf32> to vector<2x32xf32>
    %227 = vector.extract_strided_slice %224 {offsets = [0, 64], sizes = [2, 32], strides = [1, 1]} : vector<2x128xf32> to vector<2x32xf32>
    %228 = vector.extract_strided_slice %223 {offsets = [0, 96], sizes = [2, 32], strides = [1, 1]} : vector<2x128xf32> to vector<2x32xf32>
    %229 = arith.mulf %226, %213 : vector<2x32xf32>
    %230 = arith.mulf %225, %227 : vector<2x32xf32>
    %231 = arith.addf %229, %230 : vector<2x32xf32>
    %232 = math.tanh %231 : vector<2x32xf32>
    %233 = arith.mulf %228, %232 : vector<2x32xf32>
    %234 = vector.extract_strided_slice %158 {offsets = [8, 0], sizes = [2, 128], strides = [1, 1]} : vector<16x128xf32> to vector<2x128xf32>
    %cst_42 = arith.constant dense<0.000000e+00> : vector<2x128xf32>
    %235 = tpu.matmul %233, %159, %cst_42 {dimension_numbers = #tpu.dot_dimension_numbers<[1], [0], [0], [1], [0, 0, 1, 1], [], []>} : vector<2x32xf32>, vector<32x128xf32>, vector<2x128xf32> -> vector<2x128xf32>
    %236 = arith.addf %234, %235 : vector<2x128xf32>
    %237 = arith.negf %236 : vector<2x128xf32>
    %238 = math.exp %237 : vector<2x128xf32>
    %cst_43 = arith.constant 1.000000e+00 : f32
    %239 = vector.broadcast %cst_43 : f32 to vector<2x128xf32>
    %240 = arith.addf %239, %238 : vector<2x128xf32>
    %241 = arith.divf %239, %240 : vector<2x128xf32>
    %242 = math.tanh %236 : vector<2x128xf32>
    %243 = vector.extract_strided_slice %241 {offsets = [0, 0], sizes = [2, 32], strides = [1, 1]} : vector<2x128xf32> to vector<2x32xf32>
    %244 = vector.extract_strided_slice %241 {offsets = [0, 32], sizes = [2, 32], strides = [1, 1]} : vector<2x128xf32> to vector<2x32xf32>
    %245 = vector.extract_strided_slice %242 {offsets = [0, 64], sizes = [2, 32], strides = [1, 1]} : vector<2x128xf32> to vector<2x32xf32>
    %246 = vector.extract_strided_slice %241 {offsets = [0, 96], sizes = [2, 32], strides = [1, 1]} : vector<2x128xf32> to vector<2x32xf32>
    %247 = arith.mulf %244, %231 : vector<2x32xf32>
    %248 = arith.mulf %243, %245 : vector<2x32xf32>
    %249 = arith.addf %247, %248 : vector<2x32xf32>
    %250 = math.tanh %249 : vector<2x32xf32>
    %251 = arith.mulf %246, %250 : vector<2x32xf32>
    %252 = vector.extract_strided_slice %158 {offsets = [10, 0], sizes = [2, 128], strides = [1, 1]} : vector<16x128xf32> to vector<2x128xf32>
    %cst_44 = arith.constant dense<0.000000e+00> : vector<2x128xf32>
    %253 = tpu.matmul %251, %159, %cst_44 {dimension_numbers = #tpu.dot_dimension_numbers<[1], [0], [0], [1], [0, 0, 1, 1], [], []>} : vector<2x32xf32>, vector<32x128xf32>, vector<2x128xf32> -> vector<2x128xf32>
    %254 = arith.addf %252, %253 : vector<2x128xf32>
    %255 = arith.negf %254 : vector<2x128xf32>
    %256 = math.exp %255 : vector<2x128xf32>
    %cst_45 = arith.constant 1.000000e+00 : f32
    %257 = vector.broadcast %cst_45 : f32 to vector<2x128xf32>
    %258 = arith.addf %257, %256 : vector<2x128xf32>
    %259 = arith.divf %257, %258 : vector<2x128xf32>
    %260 = math.tanh %254 : vector<2x128xf32>
    %261 = vector.extract_strided_slice %259 {offsets = [0, 0], sizes = [2, 32], strides = [1, 1]} : vector<2x128xf32> to vector<2x32xf32>
    %262 = vector.extract_strided_slice %259 {offsets = [0, 32], sizes = [2, 32], strides = [1, 1]} : vector<2x128xf32> to vector<2x32xf32>
    %263 = vector.extract_strided_slice %260 {offsets = [0, 64], sizes = [2, 32], strides = [1, 1]} : vector<2x128xf32> to vector<2x32xf32>
    %264 = vector.extract_strided_slice %259 {offsets = [0, 96], sizes = [2, 32], strides = [1, 1]} : vector<2x128xf32> to vector<2x32xf32>
    %265 = arith.mulf %262, %249 : vector<2x32xf32>
    %266 = arith.mulf %261, %263 : vector<2x32xf32>
    %267 = arith.addf %265, %266 : vector<2x32xf32>
    %268 = math.tanh %267 : vector<2x32xf32>
    %269 = arith.mulf %264, %268 : vector<2x32xf32>
    %270 = vector.extract_strided_slice %158 {offsets = [12, 0], sizes = [2, 128], strides = [1, 1]} : vector<16x128xf32> to vector<2x128xf32>
    %cst_46 = arith.constant dense<0.000000e+00> : vector<2x128xf32>
    %271 = tpu.matmul %269, %159, %cst_46 {dimension_numbers = #tpu.dot_dimension_numbers<[1], [0], [0], [1], [0, 0, 1, 1], [], []>} : vector<2x32xf32>, vector<32x128xf32>, vector<2x128xf32> -> vector<2x128xf32>
    %272 = arith.addf %270, %271 : vector<2x128xf32>
    %273 = arith.negf %272 : vector<2x128xf32>
    %274 = math.exp %273 : vector<2x128xf32>
    %cst_47 = arith.constant 1.000000e+00 : f32
    %275 = vector.broadcast %cst_47 : f32 to vector<2x128xf32>
    %276 = arith.addf %275, %274 : vector<2x128xf32>
    %277 = arith.divf %275, %276 : vector<2x128xf32>
    %278 = math.tanh %272 : vector<2x128xf32>
    %279 = vector.extract_strided_slice %277 {offsets = [0, 0], sizes = [2, 32], strides = [1, 1]} : vector<2x128xf32> to vector<2x32xf32>
    %280 = vector.extract_strided_slice %277 {offsets = [0, 32], sizes = [2, 32], strides = [1, 1]} : vector<2x128xf32> to vector<2x32xf32>
    %281 = vector.extract_strided_slice %278 {offsets = [0, 64], sizes = [2, 32], strides = [1, 1]} : vector<2x128xf32> to vector<2x32xf32>
    %282 = vector.extract_strided_slice %277 {offsets = [0, 96], sizes = [2, 32], strides = [1, 1]} : vector<2x128xf32> to vector<2x32xf32>
    %283 = arith.mulf %280, %267 : vector<2x32xf32>
    %284 = arith.mulf %279, %281 : vector<2x32xf32>
    %285 = arith.addf %283, %284 : vector<2x32xf32>
    %286 = math.tanh %285 : vector<2x32xf32>
    %287 = arith.mulf %282, %286 : vector<2x32xf32>
    %288 = vector.extract_strided_slice %158 {offsets = [14, 0], sizes = [2, 128], strides = [1, 1]} : vector<16x128xf32> to vector<2x128xf32>
    %cst_48 = arith.constant dense<0.000000e+00> : vector<2x128xf32>
    %289 = tpu.matmul %287, %159, %cst_48 {dimension_numbers = #tpu.dot_dimension_numbers<[1], [0], [0], [1], [0, 0, 1, 1], [], []>} : vector<2x32xf32>, vector<32x128xf32>, vector<2x128xf32> -> vector<2x128xf32>
    %290 = arith.addf %288, %289 : vector<2x128xf32>
    %291 = arith.negf %290 : vector<2x128xf32>
    %292 = math.exp %291 : vector<2x128xf32>
    %cst_49 = arith.constant 1.000000e+00 : f32
    %293 = vector.broadcast %cst_49 : f32 to vector<2x128xf32>
    %294 = arith.addf %293, %292 : vector<2x128xf32>
    %295 = arith.divf %293, %294 : vector<2x128xf32>
    %296 = math.tanh %290 : vector<2x128xf32>
    %297 = vector.extract_strided_slice %295 {offsets = [0, 0], sizes = [2, 32], strides = [1, 1]} : vector<2x128xf32> to vector<2x32xf32>
    %298 = vector.extract_strided_slice %295 {offsets = [0, 32], sizes = [2, 32], strides = [1, 1]} : vector<2x128xf32> to vector<2x32xf32>
    %299 = vector.extract_strided_slice %296 {offsets = [0, 64], sizes = [2, 32], strides = [1, 1]} : vector<2x128xf32> to vector<2x32xf32>
    %300 = vector.extract_strided_slice %295 {offsets = [0, 96], sizes = [2, 32], strides = [1, 1]} : vector<2x128xf32> to vector<2x32xf32>
    %301 = arith.mulf %298, %285 : vector<2x32xf32>
    %302 = arith.mulf %297, %299 : vector<2x32xf32>
    %303 = arith.addf %301, %302 : vector<2x32xf32>
    %304 = math.tanh %303 : vector<2x32xf32>
    %305 = arith.mulf %300, %304 : vector<2x32xf32>
    %c0_50 = arith.constant 0 : index
    %c0_51 = arith.constant 0 : index
    %306 = vector.load %arg7[%c0_50, %c0_51] : memref<32x32xf32, #tpu.memory_space<vmem>>, vector<32x32xf32>
    %cst_52 = arith.constant dense<0.000000e+00> : vector<2x32xf32>
    %307 = tpu.matmul %305, %306, %cst_52 {dimension_numbers = #tpu.dot_dimension_numbers<[1], [0], [0], [1], [0, 0, 1, 1], [], []>} : vector<2x32xf32>, vector<32x32xf32>, vector<2x32xf32> -> vector<2x32xf32>
    %c0_53 = arith.constant 0 : index
    %c0_54 = arith.constant 0 : index
    %308 = vector.load %arg8[%c0_53, %c0_54] : memref<1x32xf32, #tpu.memory_space<vmem>>, vector<1x32xf32>
    %309 = vector.broadcast %308 : vector<1x32xf32> to vector<2x32xf32>
    %310 = arith.addf %307, %309 : vector<2x32xf32>
    %cst_55 = arith.constant 0.000000e+00 : f32
    %311 = vector.broadcast %cst_55 : f32 to vector<2x32xf32>
    %312 = arith.cmpf ogt, %310, %311 : vector<2x32xf32>
    %cst_56 = arith.constant 0.000000e+00 : f32
    %313 = vector.broadcast %cst_56 : f32 to vector<2x32xf32>
    %314 = arith.minimumf %310, %313 : vector<2x32xf32>
    %315 = math.exp %314 : vector<2x32xf32>
    %cst_57 = arith.constant 1.000000e+00 : f32
    %316 = vector.broadcast %cst_57 : f32 to vector<2x32xf32>
    %317 = arith.subf %315, %316 : vector<2x32xf32>
    %318 = arith.select %312, %310, %317 : vector<2x32xi1>, vector<2x32xf32>
    %c0_58 = arith.constant 0 : index
    %c0_59 = arith.constant 0 : index
    %319 = vector.load %arg9[%c0_58, %c0_59] : memref<32x1xf32, #tpu.memory_space<vmem>>, vector<32x1xf32>
    %cst_60 = arith.constant dense<0.000000e+00> : vector<2x1xf32>
    %320 = tpu.matmul %318, %319, %cst_60 {dimension_numbers = #tpu.dot_dimension_numbers<[1], [0], [0], [1], [0, 0, 1, 1], [], []>} : vector<2x32xf32>, vector<32x1xf32>, vector<2x1xf32> -> vector<2x1xf32>
    %c0_61 = arith.constant 0 : index
    %c0_62 = arith.constant 0 : index
    %321 = vector.load %arg10[%c0_61, %c0_62] : memref<1x1xf32, #tpu.memory_space<vmem>>, vector<1x1xf32>
    %322 = vector.broadcast %321 : vector<1x1xf32> to vector<2x1xf32>
    %323 = arith.addf %320, %322 : vector<2x1xf32>
    %c0_63 = arith.constant 0 : index
    %c0_64 = arith.constant 0 : index
    %324 = vector.load %arg11[%c0_63, %c0_64] : memref<2x1xf32, #tpu.memory_space<vmem>>, vector<2x1xf32>
    tpu.vector_store %arg11[%c0_63, %c0_64], %323 {strides = array<i32>} : memref<2x1xf32, #tpu.memory_space<vmem>>, vector<2x1xf32>,
    return
  }
}

</mosaic_0001>

<bundles_post_ra>
// kernel: tpu_custom_call.1
= control target key start
LH: loop header
LB: loop body
LE: loop exit
PB: predicated region body
PF: predicated region fallthrough
CT: control target
= control target key end

     0   :  { %s1936_s0 = inlined_call_operand.vmem [shape: f32[16,4], index: 0, kind: input, shape index: {}]   ;;  %s1937_s1 = inlined_call_operand.vmem [shape: f32[4,128], index: 1, kind: input, shape index: {}]   ;;  %s1938_s2 = inlined_call_operand.vmem [shape: f32[32,128], index: 2, kind: input, shape index: {}]   ;;  %s1939_s3 = inlined_call_operand.vmem [shape: f32[1,128], index: 3, kind: input, shape index: {}]   ;;  %s1940_s4 = inlined_call_operand.hbm [shape: f32[32,128], index: 4, kind: input, shape index: {}]   ;;  %s1941_s5 = inlined_call_operand.hbm [shape: f32[32,128], index: 5, kind: input, shape index: {}]   ;;  %s1942_s6 = inlined_call_operand.vmem [shape: f32[1,128], index: 6, kind: input, shape index: {}]   ;;  %s1943_s7 = inlined_call_operand.hbm [shape: f32[32,32], index: 7, kind: input, shape index: {}]   ;;  %s1944_s8 = inlined_call_operand.vmem [shape: f32[1,32], index: 8, kind: input, shape index: {}]   ;;  %s1945_s9 = inlined_call_operand.vmem [shape: f32[32,1], index: 9, kind: input, shape index: {}]   ;;  %s1946_s10 = inlined_call_operand.<no memory space> [shape: f32[1,1], index: 10, kind: input, shape index: {}]   ;;  %s1947_s11 = inlined_call_operand.vmem [shape: f32[2,1], index: 11, kind: output, shape index: {}]  }
   0x1   :  { %v16_v0 = vstv %s1946_s10 }
   0x2   :  { %17 = vst [vmem:[#allocation2] sm:$0x1] %v16_v0 }
   0x3   :  { %18 = vsyncpa [#allocation4], 0 }
   0x4   :  { %19 = vsyncpa [#allocation6], 0  ;;  %s45_s21 = sshll.u32 %s1941_s5, 4  ;;  %s1610_s22 = smov [#allocation5]   ;;  %s46_s21 = int_to_ptr.hbm [resolvable:$true] %s45_s21 }
   0x5   :  { %s47_s23 = sshll.u32 %s1610_s22, 4  ;;  %s32_s26 = sshll.u32 %s1940_s4, 4  ;;  %s48_s23 = int_to_ptr.vmem [resolvable:$true] %s47_s23  ;;  %s33_s26 = int_to_ptr.hbm [resolvable:$true] %s32_s26 }
   0x6   :  { %s1611_s27 = smov 128   ;;  %s1612_s28 = smov 8  }
   0x7   :  { %53 = dma.hbm_to_vmem [thread:$0]  %s46_s21, 512, %s48_s23, [#allocation6], %s1611_s27, %s1611_s27, %s1612_s28  }
   0x8   :  { %s1613_s10 = smov [#allocation3]   ;;  %s60_s13 = sshll.u32 %s1943_s7, 4  ;;  %s61_s13 = int_to_ptr.hbm [resolvable:$true] %s60_s13 }
   0x9   :  { %s34_s29 = sshll.u32 %s1613_s10, 4  ;;  %s1614_s5 = smov [#allocation7]   ;;  %s35_s29 = int_to_ptr.vmem [resolvable:$true] %s34_s29 }
   0xa   :  { %40 = dma.hbm_to_vmem [thread:$0]  %s33_s26, 512, %s35_s29, [#allocation4], %s1611_s27, %s1611_s27, %s1612_s28  }
   0xb   :  { %s62_s14 = sshll.u32 %s1614_s5, 4  ;;  %s63_s14 = int_to_ptr.vmem [resolvable:$true] %s62_s14 }
   0xc   :  { %68 = dma.hbm_to_vmem [thread:$0]  %s61_s13, 512, %s63_s14, [#allocation6], %s1611_s27, %s1611_s27, %s1612_s28  }
   0xd   :  { %1606 = dma.done.wait [#allocation4], 512  }
   0xe   :  { %1607 = vsyncadd [#allocation4], 4294966784 }
   0xf   :  { %1608 = dma.done.wait [#allocation6], 1024  }
  0x10   :  { %1609 = vsyncadd [#allocation6], 4294966272  ;;  %vm101_vm0 = vcmask 1043456   ;;  %vm94_vm1 = vcmask 31744   ;;  %v131_v1 = vld [vmem:[%s1938_s2 + $0x18] sm:$0xff]  ;;  %v130_v2 = vld [vmem:[%s1938_s2 + $0x10] sm:$0xff] }
  0x11   :  { %v89_v3 = vld [vmem:[%s1937_s1] sm:$0xf]  ;;  %148 = vmatpush.msra.mxu1 %v131_v1  ;;  %v129_v5 = vld [vmem:[%s1938_s2 + $0x8] sm:$0xff]  ;;  %211 = vmatpush.msra.mxu2 %v131_v1  ;;  %v1615_v7 = vmov 0.0   ;;  %s1616_s25 = smov 64   ;;  %vm132_vm6 = vcmask 261120  }
  0x12   :  { %1354 = vmatpush.msk.msra.mxu0 %vm101_vm0, %v89_v3  ;;  %v87_v4 = vld [vmem:[%s1936_s0] sm:$0xff]  ;;  %281 = vmatpush.msra.mxu3 %v131_v1  ;;  %vm679_vm15 = vcmask 1041408  }
  0x13   :  { %1355 = vmatmul.msk.f32.vlgmr.msra.gmra.mxu0 %vm94_vm1, %v87_v4  ;;  %149 = vmatpush.msra.mxu1 %v130_v2  ;;  %v128_v6 = vld [vmem:[%s1938_s2] sm:$0xff] }
  0x14   :  { %212 = vmatpush.msra.mxu2 %v130_v2  ;;  %557 = vmatpush.msrb.mxu0 %v131_v1  ;;  %v1714_v8 = vld [vmem:[%s1939_s3] ss:$0 sm:$0xff]  ;;  %s1617_s3 = smov 32  }
  0x15   :  { %150 = vmatpush.msra.mxu1 %v129_v5  ;;  %282 = vmatpush.msra.mxu3 %v130_v2 }
  0x16   :  { %213 = vmatpush.msra.mxu2 %v129_v5  ;;  %558 = vmatpush.msrb.mxu0 %v130_v2 }
  0x17   :  { %151 = vmatpush.msra.mxu1 %v128_v6  ;;  %283 = vmatpush.msra.mxu3 %v129_v5 }
  0x18   :  { %152 = vmatmul.f32.vlgmr.msra.gmra.mxu1 %v1615_v7  ;;  %214 = vmatpush.msra.mxu2 %v128_v6 }
  0x19   :  { %284 = vmatpush.msra.mxu3 %v128_v6  ;;  %351 = vmatpush.msrb.mxu1 %v131_v1 }
  0x1a   :  { %421 = vmatpush.msrb.mxu2 %v131_v1  ;;  %559 = vmatpush.msrb.mxu0 %v129_v5 }
  0x1b   :  { %487 = vmatpush.msrb.mxu3 %v131_v1  ;;  %352 = vmatpush.msrb.mxu1 %v130_v2 }
  0x1c   :  { %422 = vmatpush.msrb.mxu2 %v130_v2  ;;  %560 = vmatpush.msrb.mxu0 %v128_v6 }
  0x1d   :  { %488 = vmatpush.msrb.mxu3 %v130_v2  ;;  %353 = vmatpush.msrb.mxu1 %v129_v5 }
  0x1e   :  { %423 = vmatpush.msrb.mxu2 %v129_v5 }
  0x1f   :  { %489 = vmatpush.msrb.mxu3 %v129_v5  ;;  %354 = vmatpush.msrb.mxu1 %v128_v6 }
  0x20   :  { %424 = vmatpush.msrb.mxu2 %v128_v6 }
  0x21   :  { %490 = vmatpush.msrb.mxu3 %v128_v6  ;;  %627 = vmatpush.msra.mxu1 %v131_v1 }
  0x23   :  { %628 = vmatpush.msra.mxu1 %v130_v2 }
  0x25   :  { %629 = vmatpush.msra.mxu1 %v129_v5 }
  0x27   :  { %630 = vmatpush.msra.mxu1 %v128_v6 }
  0x90   :  { %v122_v9 = vpop.f32.mrf.mxu0 }
  0x91   :  { %v1717_v10 = vadd.f32 %v1714_v8, %v122_v9 }
  0x95   :  { %v153_v11 = vpop.f32.mrf.mxu1 }
  0x96   :  { %v156_v12 = vadd.f32 %v153_v11, %v1717_v10 }
  0x98   :  { %1404 = vtanh.f32 %v156_v12  ;;  %v1357_v14 = vmul.f32 -1.442695, %v156_v12 }
  0x9a   :  { %1406 = vpow2.f32 %v1357_v14 }
  0x9e   :  { %v1405_v13 = vpop.eup %1404 }
  0x9f   :  { %179 = vrot.lane.b32.xlu0 %v1405_v13, %s1616_s25 }
  0xa0   :  { %v1407_v15 = vpop.eup %1406 }
  0xa1   :  { %v160_v16 = vadd.f32 1.0, %v1407_v15 }
  0xa3   :  { %1408 = vrcp.f32 %v160_v16  ;;  %v172_v22 = vand.u32 2147483648, %v160_v16  ;;  %vm166_vm3 = vweird.f32 %v160_v16  ;;  %v170_v23 = vand.u32 2147483647, %v160_v16 }
  0xa5   :  { %v173_v25 = vor.u32 1.1754944e-38, %v172_v22  ;;  %vm171_vm5 = vcmp.eq.f32.partialorder %v170_v23, 8.507059e+37 }
  0xa9   :  { %v1409_v17 = vpop.eup %1408 }
  0xaa   :  { %v162_v18 = vmul.f32 %v1409_v17, %v160_v16  ;;  %vm167_vm2 = vweird.f32 %v1409_v17 }
  0xab   :  { %vm168_vm4 = vmor %vm166_vm3, %vm167_vm2 }
  0xac   :  { %v163_v19 = vsub.f32 1.0, %v162_v18 }
  0xae   :  { %v164_v20 = vmul.f32 %v1409_v17, %v163_v19 }
  0xb0   :  { %v165_v21 = vadd.f32 %v1409_v17, %v164_v20 }
  0xb2   :  { %v169_v24 = vsel %vm168_vm4, %v1409_v17, %v165_v21 }
  0xb3   :  { %v174_v27 = vsel %vm171_vm5, %v173_v25, %v169_v24 }
  0xb4   :  { %v177_v29 = vmul.f32 0.0, %v174_v27 }
 0x111   :  { %v180_v26 = vpop.permute.xlu0 %179 }
 0x112   :  { %v182_v28 = vmul.f32 %v180_v26, %v174_v27 }
 0x114   :  { %184 = vrot.lane.b32.xlu0 %v182_v28, %s1617_s3 }
 0x186   :  { %v185_v30 = vpop.permute.xlu0 %184 }
 0x187   :  { %v187_v31 = vadd.f32 %v185_v30, %v177_v29 }
 0x189   :  { %1410 = vtanh.f32 %v187_v31  ;;  %v244_v55 = vrot.slane %v187_v31, 6 }
 0x18f   :  { %v1411_v32 = vpop.eup %1410 }
 0x190   :  { %190 = vrot.lane.b32.xlu1 %v1411_v32, %s1616_s25 }
 0x202   :  { %v191_v33 = vpop.permute.xlu1 %190 }
 0x203   :  { %v1723_v34 = vmul.f32 %v191_v33, %v174_v27 }
 0x205   :  { %195 = vrot.lane.b32.xlu1 %v1723_v34, %s1617_s3 }
 0x277   :  { %v196_v35 = vpop.permute.xlu1 %195 }
 0x278   :  { %1358 = vmatmul.msk.f32.vlgmr.msra.gmra.mxu2 %vm132_vm6, %v196_v35 }
 0x2fb   :  { %v216_v36 = vpop.f32.mrf.mxu2 }
 0x2fc   :  { %v220_v37 = vrot.slane %v216_v36, 6 }
 0x2fe   :  { %v222_v38 = vadd.f32 %v220_v37, %v1717_v10 }
 0x300   :  { %1412 = vtanh.f32 %v222_v38  ;;  %v1359_v40 = vmul.f32 -1.442695, %v222_v38 }
 0x302   :  { %1414 = vpow2.f32 %v1359_v40 }
 0x306   :  { %v1413_v39 = vpop.eup %1412 }
 0x307   :  { %248 = vrot.lane.b32.xlu2 %v1413_v39, %s1616_s25 }
 0x308   :  { %v1415_v41 = vpop.eup %1414 }
 0x309   :  { %v226_v42 = vadd.f32 1.0, %v1415_v41 }
 0x30b   :  { %1416 = vrcp.f32 %v226_v42  ;;  %v238_v48 = vand.u32 2147483648, %v226_v42  ;;  %vm232_vm8 = vweird.f32 %v226_v42  ;;  %v236_v49 = vand.u32 2147483647, %v226_v42 }
 0x30d   :  { %v239_v51 = vor.u32 1.1754944e-38, %v238_v48  ;;  %vm237_vm10 = vcmp.eq.f32.partialorder %v236_v49, 8.507059e+37 }
 0x311   :  { %v1417_v43 = vpop.eup %1416 }
 0x312   :  { %v228_v44 = vmul.f32 %v1417_v43, %v226_v42  ;;  %vm233_vm7 = vweird.f32 %v1417_v43 }
 0x313   :  { %vm234_vm9 = vmor %vm232_vm8, %vm233_vm7  ;;  %vm682_vm7 = vcmask 1045504  }
 0x314   :  { %v229_v45 = vsub.f32 1.0, %v228_v44 }
 0x316   :  { %v230_v46 = vmul.f32 %v1417_v43, %v229_v45 }
 0x318   :  { %v231_v47 = vadd.f32 %v1417_v43, %v230_v46 }
 0x31a   :  { %v235_v50 = vsel %vm234_vm9, %v1417_v43, %v231_v47 }
 0x31b   :  { %v240_v53 = vsel %vm237_vm10, %v239_v51, %v235_v50 }
 0x31c   :  { %v246_v56 = vmul.f32 %v244_v55, %v240_v53 }
 0x361   :  { %v249_v52 = vpop.permute.xlu2 %248 }
 0x362   :  { %v251_v54 = vmul.f32 %v249_v52, %v240_v53 }
 0x364   :  { %253 = vrot.lane.b32.xlu2 %v251_v54, %s1617_s3 }
 0x3be   :  { %v254_v57 = vpop.permute.xlu2 %253 }
 0x3bf   :  { %v256_v58 = vadd.f32 %v254_v57, %v246_v56 }
 0x3c1   :  { %1418 = vtanh.f32 %v256_v58  ;;  %v314_v22 = vrot.slane %v256_v58, 6 }
 0x3c7   :  { %v1419_v59 = vpop.eup %1418 }
 0x3c8   :  { %259 = vrot.lane.b32.xlu0 %v1419_v59, %s1616_s25 }
 0x43a   :  { %v260_v60 = vpop.permute.xlu0 %259 }
 0x43b   :  { %v262_v61 = vmul.f32 %v260_v60, %v240_v53  ;;  %v88_v60 = vld [vmem:[%s1936_s0 + $0x8] sm:$0xff] }
 0x43c   :  { %1356 = vmatmul.msk.f32.gmra.mxu0 %vm94_vm1, %v88_v60 }
 0x43d   :  { %v264_v62 = vrot.slane %v262_v61, 2  ;;  %v680_v29 = vsel %vm679_vm15, %v1723_v34, %v262_v61 }
 0x43f   :  { %265 = vrot.lane.b32.xlu1 %v264_v62, %s1617_s3 }
 0x4b1   :  { %v266_v63 = vpop.permute.xlu1 %265 }
 0x4b2   :  { %1360 = vmatmul.msk.f32.vlgmr.msra.gmra.mxu3 %vm132_vm6, %v266_v63 }
 0x4b9   :  { %v125_v62 = vpop.f32.mrf.mxu0 }
 0x4ba   :  { %v1755_v63 = vadd.f32 %v1714_v8, %v125_v62 }
 0x535   :  { %v286_v0 = vpop.f32.mrf.mxu3 }
 0x536   :  { %v290_v1 = vrot.slane %v286_v0, 4 }
 0x538   :  { %v292_v2 = vadd.f32 %v290_v1, %v1717_v10 }
 0x53a   :  { %1420 = vtanh.f32 %v292_v2  ;;  %v1361_v4 = vmul.f32 -1.442695, %v292_v2 }
 0x53c   :  { %1422 = vpow2.f32 %v1361_v4 }
 0x540   :  { %v1421_v3 = vpop.eup %1420 }
 0x541   :  { %318 = vrot.lane.b32.xlu2 %v1421_v3, %s1616_s25 }
 0x542   :  { %v1423_v5 = vpop.eup %1422 }
 0x543   :  { %v296_v6 = vadd.f32 1.0, %v1423_v5 }
 0x545   :  { %1424 = vrcp.f32 %v296_v6  ;;  %v308_v15 = vand.u32 2147483648, %v296_v6  ;;  %vm302_vm12 = vweird.f32 %v296_v6  ;;  %v306_v16 = vand.u32 2147483647, %v296_v6 }
 0x547   :  { %v309_v18 = vor.u32 1.1754944e-38, %v308_v15  ;;  %vm307_vm14 = vcmp.eq.f32.partialorder %v306_v16, 8.507059e+37 }
 0x54b   :  { %v1425_v9 = vpop.eup %1424 }
 0x54c   :  { %v298_v11 = vmul.f32 %v1425_v9, %v296_v6  ;;  %vm303_vm11 = vweird.f32 %v1425_v9 }
 0x54d   :  { %vm304_vm13 = vmor %vm302_vm12, %vm303_vm11 }
 0x54e   :  { %v299_v12 = vsub.f32 1.0, %v298_v11 }
 0x550   :  { %v300_v13 = vmul.f32 %v1425_v9, %v299_v12 }
 0x552   :  { %v301_v14 = vadd.f32 %v1425_v9, %v300_v13 }
 0x554   :  { %v305_v17 = vsel %vm304_vm13, %v1425_v9, %v301_v14 }
 0x555   :  { %v310_v20 = vsel %vm307_vm14, %v309_v18, %v305_v17 }
 0x556   :  { %v316_v23 = vmul.f32 %v314_v22, %v310_v20  ;;  %v688_v22 = vld [vmem:[#allocation3 + $0x8] sm:$0xff] }
 0x59b   :  { %v319_v19 = vpop.permute.xlu2 %318 }
 0x59c   :  { %v321_v21 = vmul.f32 %v319_v19, %v310_v20 }
 0x59e   :  { %323 = vrot.lane.b32.xlu0 %v321_v21, %s1617_s3  ;;  %v689_v21 = vld [vmem:[#allocation3 + $0x10] sm:$0xff] }
 0x610   :  { %v324_v24 = vpop.permute.xlu0 %323 }
 0x611   :  { %v326_v25 = vadd.f32 %v324_v24, %v316_v23  ;;  %v687_v23 = vld [vmem:[#allocation3] sm:$0xff] }
 0x613   :  { %1426 = vtanh.f32 %v326_v25  ;;  %v384_v51 = vrot.slane %v326_v25, 6 }
 0x619   :  { %v1427_v26 = vpop.eup %1426 }
 0x61a   :  { %329 = vrot.lane.b32.xlu1 %v1427_v26, %s1616_s25 }
 0x68c   :  { %v330_v27 = vpop.permute.xlu1 %329 }
 0x68d   :  { %v332_v28 = vmul.f32 %v330_v27, %v310_v20  ;;  %v690_v20 = vld [vmem:[#allocation3 + $0x18] sm:$0xff] }
 0x68e   :  { %717 = vmatpush.msra.mxu2 %v690_v20 }
 0x68f   :  { %v334_v30 = vrot.slane %v332_v28, 4  ;;  %v681_v31 = vsel %vm101_vm0, %v680_v29, %v332_v28 }
 0x690   :  { %718 = vmatpush.msra.mxu2 %v689_v21 }
 0x691   :  { %335 = vrot.lane.b32.xlu2 %v334_v30, %s1617_s3 }
 0x692   :  { %719 = vmatpush.msra.mxu2 %v688_v22 }
 0x694   :  { %720 = vmatpush.msra.mxu2 %v687_v23 }
 0x6eb   :  { %v336_v32 = vpop.permute.xlu2 %335 }
 0x6ec   :  { %1362 = vmatmul.msk.f32.vlgmr.msrb.gmra.mxu1 %vm132_vm6, %v336_v32  ;;  %v1770_v32 = vld [vmem:[#allocation5 + $0x18] sm:$0xff] }
 0x6ed   :  { %744 = vmatpush.msra.mxu3 %v1770_v32  ;;  %807 = vmatpush.msra.mxu0 %v1770_v32 }
 0x6ee   :  { %877 = vmatpush.msrb.mxu1 %v1770_v32 }
 0x769   :  { %v356_v33 = vpop.f32.mrf.mxu1 }
 0x76a   :  { %v360_v35 = vrot.slane %v356_v33, 2  ;;  %v1772_v33 = vld [vmem:[#allocation5 + $0x10] sm:$0xff] }
 0x76b   :  { %745 = vmatpush.msra.mxu3 %v1772_v33  ;;  %808 = vmatpush.msra.mxu0 %v1772_v33 }
 0x76c   :  { %v362_v36 = vadd.f32 %v360_v35, %v1717_v10  ;;  %v1776_v35 = vld [vmem:[#allocation5 + $0x8] sm:$0xff]  ;;  %878 = vmatpush.msrb.mxu1 %v1772_v33 }
 0x76d   :  { %746 = vmatpush.msra.mxu3 %v1776_v35  ;;  %809 = vmatpush.msra.mxu0 %v1776_v35 }
 0x76e   :  { %1428 = vtanh.f32 %v362_v36  ;;  %v1363_v38 = vmul.f32 -1.442695, %v362_v36  ;;  %v1782_v36 = vld [vmem:[#allocation5] sm:$0xff]  ;;  %879 = vmatpush.msrb.mxu1 %v1776_v35 }
 0x76f   :  { %747 = vmatpush.msra.mxu3 %v1782_v36  ;;  %810 = vmatpush.msra.mxu0 %v1782_v36 }
 0x770   :  { %1430 = vpow2.f32 %v1363_v38  ;;  %880 = vmatpush.msrb.mxu1 %v1782_v36 }
 0x774   :  { %v1429_v37 = vpop.eup %1428 }
 0x775   :  { %388 = vrot.lane.b32.xlu0 %v1429_v37, %s1616_s25 }
 0x776   :  { %v1431_v39 = vpop.eup %1430 }
 0x777   :  { %v366_v34 = vadd.f32 1.0, %v1431_v39 }
 0x779   :  { %1432 = vrcp.f32 %v366_v34  ;;  %v378_v45 = vand.u32 2147483648, %v366_v34  ;;  %vm372_vm3 = vweird.f32 %v366_v34  ;;  %v376_v46 = vand.u32 2147483647, %v366_v34 }
 0x77b   :  { %v379_v47 = vor.u32 1.1754944e-38, %v378_v45  ;;  %vm377_vm5 = vcmp.eq.f32.partialorder %v376_v46, 8.507059e+37 }
 0x77f   :  { %v1433_v40 = vpop.eup %1432 }
 0x780   :  { %v368_v41 = vmul.f32 %v1433_v40, %v366_v34  ;;  %vm373_vm2 = vweird.f32 %v1433_v40  ;;  %v1807_v34 = vld [vmem:[%s1942_s6] ss:$0 sm:$0xff] }
 0x781   :  { %vm374_vm4 = vmor %vm372_vm3, %vm373_vm2 }
 0x782   :  { %v369_v42 = vsub.f32 1.0, %v368_v41 }
 0x784   :  { %v370_v43 = vmul.f32 %v1433_v40, %v369_v42 }
 0x786   :  { %v371_v44 = vadd.f32 %v1433_v40, %v370_v43 }
 0x788   :  { %v375_v10 = vsel %vm374_vm4, %v1433_v40, %v371_v44 }
 0x789   :  { %v380_v49 = vsel %vm377_vm5, %v379_v47, %v375_v10 }
 0x78a   :  { %v386_v52 = vmul.f32 %v384_v51, %v380_v49 }
 0x7e7   :  { %v389_v48 = vpop.permute.xlu0 %388 }
 0x7e8   :  { %v391_v50 = vmul.f32 %v389_v48, %v380_v49 }
 0x7ea   :  { %393 = vrot.lane.b32.xlu1 %v391_v50, %s1617_s3 }
 0x85c   :  { %v394_v53 = vpop.permute.xlu1 %393 }
 0x85d   :  { %v396_v54 = vadd.f32 %v394_v53, %v386_v52 }
 0x85f   :  { %1434 = vtanh.f32 %v396_v54  ;;  %v451_v24 = vrot.slane %v396_v54, 6 }
 0x865   :  { %v1435_v55 = vpop.eup %1434 }
 0x866   :  { %399 = vrot.lane.b32.xlu2 %v1435_v55, %s1616_s25 }
 0x8c0   :  { %v400_v56 = vpop.permute.xlu2 %399 }
 0x8c1   :  { %v402_v57 = vmul.f32 %v400_v56, %v380_v49 }
 0x8c3   :  { %v404_v58 = vrot.slane %v402_v57, 6  ;;  %v683_v59 = vsel %vm682_vm7, %v681_v31, %v402_v57 }
 0x8c5   :  { %405 = vrot.lane.b32.xlu0 %v404_v58, %s1617_s3 }
 0x937   :  { %v406_v61 = vpop.permute.xlu0 %405 }
 0x938   :  { %1364 = vmatmul.msk.f32.vlgmr.msrb.gmra.mxu2 %vm132_vm6, %v406_v61 }
 0x939   :  { %1153 = vmatpush.msrb.mxu2 %v1770_v32 }
 0x93b   :  { %1154 = vmatpush.msrb.mxu2 %v1772_v33 }
 0x93d   :  { %1155 = vmatpush.msrb.mxu2 %v1776_v35 }
 0x93f   :  { %1156 = vmatpush.msrb.mxu2 %v1782_v36 }
 0x9bb   :  { %v426_v0 = vpop.f32.mrf.mxu2 }
 0x9bc   :  { %v429_v1 = vadd.f32 %v426_v0, %v1755_v63 }
 0x9be   :  { %1436 = vtanh.f32 %v429_v1  ;;  %v1365_v3 = vmul.f32 -1.442695, %v429_v1 }
 0x9c0   :  { %1438 = vpow2.f32 %v1365_v3 }
 0x9c4   :  { %v1437_v2 = vpop.eup %1436 }
 0x9c5   :  { %455 = vrot.lane.b32.xlu1 %v1437_v2, %s1616_s25 }
 0x9c6   :  { %v1439_v4 = vpop.eup %1438 }
 0x9c7   :  { %v433_v5 = vadd.f32 1.0, %v1439_v4 }
 0x9c9   :  { %1440 = vrcp.f32 %v433_v5  ;;  %v445_v8 = vand.u32 2147483648, %v433_v5  ;;  %vm439_vm8 = vweird.f32 %v433_v5  ;;  %v443_v14 = vand.u32 2147483647, %v433_v5 }
 0x9cb   :  { %v446_v16 = vor.u32 1.1754944e-38, %v445_v8  ;;  %vm444_vm10 = vcmp.eq.f32.partialorder %v443_v14, 8.507059e+37 }
 0x9cf   :  { %v1441_v6 = vpop.eup %1440 }
 0x9d0   :  { %v435_v9 = vmul.f32 %v1441_v6, %v433_v5  ;;  %vm440_vm1 = vweird.f32 %v1441_v6 }
 0x9d1   :  { %vm441_vm9 = vmor %vm439_vm8, %vm440_vm1 }
 0x9d2   :  { %v436_v11 = vsub.f32 1.0, %v435_v9 }
 0x9d4   :  { %v437_v12 = vmul.f32 %v1441_v6, %v436_v11 }
 0x9d6   :  { %v438_v13 = vadd.f32 %v1441_v6, %v437_v12 }
 0x9d8   :  { %v442_v15 = vsel %vm441_vm9, %v1441_v6, %v438_v13 }
 0x9d9   :  { %v447_v18 = vsel %vm444_vm10, %v446_v16, %v442_v15 }
 0x9da   :  { %v453_v25 = vmul.f32 %v451_v24, %v447_v18 }
 0xa37   :  { %v456_v17 = vpop.permute.xlu1 %455 }
 0xa38   :  { %v458_v19 = vmul.f32 %v456_v17, %v447_v18 }
 0xa3a   :  { %460 = vrot.lane.b32.xlu2 %v458_v19, %s1617_s3 }
 0xa42   :  { %697 = vrot.lane.b32.xlu2 %v683_v59, %s1617_s3 }
 0xa94   :  { %v461_v26 = vpop.permute.xlu2 %460 }
 0xa95   :  { %v1761_v27 = vadd.f32 %v461_v26, %v453_v25 }
 0xa97   :  { %1442 = vtanh.f32 %v1761_v27  ;;  %v520_v14 = vrot.slane %v1761_v27, 6 }
 0xa9c   :  { %v698_v28 = vpop.permute.xlu2 %697 }
 0xa9d   :  { %v1443_v29 = vpop.eup %1442  ;;  %1372 = vmatmul.msk.f32.vlgmr.msra.gmra.mxu2 %vm132_vm6, %v698_v28 }
 0xa9e   :  { %466 = vrot.lane.b32.xlu0 %v1443_v29, %s1616_s25 }
 0xb10   :  { %v467_v30 = vpop.permute.xlu0 %466 }
 0xb11   :  { %v1766_v31 = vmul.f32 %v467_v30, %v447_v18 }
 0xb13   :  { %471 = vrot.lane.b32.xlu1 %v1766_v31, %s1617_s3 }
 0xb20   :  { %v722_v41 = vpop.f32.mrf.mxu2 }
 0xb85   :  { %v472_v37 = vpop.permute.xlu1 %471 }
 0xb86   :  { %1366 = vmatmul.msk.f32.vlgmr.msrb.gmra.mxu3 %vm132_vm6, %v472_v37 }
 0xb87   :  { %947 = vmatpush.msrb.mxu3 %v1770_v32 }
 0xb89   :  { %948 = vmatpush.msrb.mxu3 %v1772_v33 }
 0xb8b   :  { %949 = vmatpush.msrb.mxu3 %v1776_v35 }
 0xb8d   :  { %950 = vmatpush.msrb.mxu3 %v1782_v36 }
 0xb8e   :  { %748 = vmatmul.f32.vlgmr.msra.gmra.mxu3 %v1615_v7  ;;  %v1811_v7 = vadd.f32 %v1807_v34, %v722_v41 }
 0xb8f   :  { %1223 = vmatpush.msra.mxu3 %v1770_v32 }
 0xb91   :  { %1224 = vmatpush.msra.mxu3 %v1772_v33 }
 0xb93   :  { %1225 = vmatpush.msra.mxu3 %v1776_v35 }
 0xb95   :  { %1226 = vmatpush.msra.mxu3 %v1782_v36 }
 0xc09   :  { %v492_v38 = vpop.f32.mrf.mxu3 }
 0xc0a   :  { %v496_v39 = vrot.slane %v492_v38, 6 }
 0xc0c   :  { %v498_v40 = vadd.f32 %v496_v39, %v1755_v63 }
 0xc0e   :  { %1444 = vtanh.f32 %v498_v40  ;;  %v1367_v46 = vmul.f32 -1.442695, %v498_v40 }
 0xc11   :  { %v749_v42 = vpop.f32.mrf.mxu3 }
 0xc12   :  { %v752_v43 = vadd.f32 %v749_v42, %v1811_v7 }
 0xc14   :  { %v1445_v44 = vpop.eup %1444  ;;  %1446 = vtanh.f32 %v752_v43  ;;  %v1374_v10 = vmul.f32 -1.442695, %v752_v43 }
 0xc15   :  { %524 = vrot.lane.b32.xlu0 %v1445_v44, %s1616_s25  ;;  %1448 = vpow2.f32 %v1367_v46 }
 0xc16   :  { %1450 = vpow2.f32 %v1374_v10 }
 0xc1a   :  { %v1447_v45 = vpop.eup %1446 }
 0xc1b   :  { %775 = vrot.lane.b32.xlu1 %v1447_v45, %s1616_s25  ;;  %v1449_v47 = vpop.eup %1448 }
 0xc1c   :  { %v502_v48 = vadd.f32 1.0, %v1449_v47  ;;  %v1451_v49 = vpop.eup %1450 }
 0xc1d   :  { %v756_v50 = vadd.f32 1.0, %v1451_v49 }
 0xc1e   :  { %1452 = vrcp.f32 %v502_v48  ;;  %v514_v59 = vand.u32 2147483648, %v502_v48  ;;  %vm508_vm12 = vweird.f32 %v502_v48  ;;  %v512_v60 = vand.u32 2147483647, %v502_v48 }
 0xc1f   :  { %1454 = vrcp.f32 %v756_v50  ;;  %v768_v4 = vand.u32 2147483648, %v756_v50  ;;  %vm762_vm3 = vweird.f32 %v756_v50  ;;  %v766_v6 = vand.u32 2147483647, %v756_v50 }
 0xc20   :  { %v515_v0 = vor.u32 1.1754944e-38, %v514_v59  ;;  %vm513_vm14 = vcmp.eq.f32.partialorder %v512_v60, 8.507059e+37 }
 0xc21   :  { %v769_v11 = vor.u32 1.1754944e-38, %v768_v4  ;;  %vm767_vm5 = vcmp.eq.f32.partialorder %v766_v6, 8.507059e+37 }
 0xc24   :  { %v1453_v51 = vpop.eup %1452 }
 0xc25   :  { %v504_v52 = vmul.f32 %v1453_v51, %v502_v48  ;;  %v1455_v53 = vpop.eup %1454  ;;  %vm509_vm11 = vweird.f32 %v1453_v51 }
 0xc26   :  { %v758_v55 = vmul.f32 %v1455_v53, %v756_v50  ;;  %vm510_vm13 = vmor %vm508_vm12, %vm509_vm11  ;;  %vm763_vm2 = vweird.f32 %v1455_v53 }
 0xc27   :  { %v505_v54 = vsub.f32 1.0, %v504_v52  ;;  %vm764_vm4 = vmor %vm762_vm3, %vm763_vm2 }
 0xc28   :  { %v759_v57 = vsub.f32 1.0, %v758_v55 }
 0xc29   :  { %v506_v56 = vmul.f32 %v1453_v51, %v505_v54 }
 0xc2a   :  { %v760_v61 = vmul.f32 %v1455_v53, %v759_v57 }
 0xc2b   :  { %v507_v58 = vadd.f32 %v1453_v51, %v506_v56 }
 0xc2c   :  { %v761_v1 = vadd.f32 %v1455_v53, %v760_v61 }
 0xc2d   :  { %v511_v62 = vsel %vm510_vm13, %v1453_v51, %v507_v58 }
 0xc2e   :  { %v516_v3 = vsel %vm513_vm14, %v515_v0, %v511_v62  ;;  %v765_v9 = vsel %vm764_vm4, %v1455_v53, %v761_v1 }
 0xc2f   :  { %v770_v13 = vsel %vm767_vm5, %v769_v11, %v765_v9  ;;  %v522_v15 = vmul.f32 %v520_v14, %v516_v3 }
 0xc30   :  { %v773_v19 = vmul.f32 0.0, %v770_v13 }
 0xc87   :  { %v525_v2 = vpop.permute.xlu0 %524 }
 0xc88   :  { %v527_v5 = vmul.f32 %v525_v2, %v516_v3 }
 0xc8a   :  { %529 = vrot.lane.b32.xlu2 %v527_v5, %s1617_s3 }
 0xc8d   :  { %v776_v12 = vpop.permute.xlu1 %775 }
 0xc8e   :  { %v778_v8 = vmul.f32 %v776_v12, %v770_v13 }
 0xc90   :  { %780 = vrot.lane.b32.xlu0 %v778_v8, %s1617_s3 }
 0xce4   :  { %v530_v16 = vpop.permute.xlu2 %529 }
 0xce5   :  { %v1819_v17 = vadd.f32 %v530_v16, %v522_v15 }
 0xce7   :  { %1456 = vtanh.f32 %v1819_v17 }
 0xced   :  { %v1457_v18 = vpop.eup %1456 }
 0xcee   :  { %535 = vrot.lane.b32.xlu1 %v1457_v18, %s1616_s25 }
 0xd02   :  { %v781_v20 = vpop.permute.xlu0 %780 }
 0xd03   :  { %v1823_v21 = vadd.f32 %v781_v20, %v773_v19 }
 0xd05   :  { %1458 = vtanh.f32 %v1823_v21  ;;  %v840_v16 = vrot.slane %v1823_v21, 6 }
 0xd0b   :  { %v1459_v22 = vpop.eup %1458 }
 0xd0c   :  { %786 = vrot.lane.b32.xlu2 %v1459_v22, %s1616_s25 }
 0xd60   :  { %v536_v23 = vpop.permute.xlu1 %535 }
 0xd61   :  { %v1827_v24 = vmul.f32 %v536_v23, %v516_v3 }
 0xd63   :  { %v540_v25 = vrot.slane %v1827_v24, 2 }
 0xd65   :  { %541 = vrot.lane.b32.xlu0 %v540_v25, %s1617_s3 }
 0xd66   :  { %v787_v26 = vpop.permute.xlu2 %786 }
 0xd67   :  { %v789_v27 = vmul.f32 %v787_v26, %v770_v13  ;;  %v590_v13 = vrot.slane %v1819_v17, 6  ;;  %v684_v26 = vsel %vm679_vm15, %v1766_v31, %v1827_v24 }
 0xd69   :  { %791 = vrot.lane.b32.xlu1 %v789_v27, %s1617_s3 }
 0xdd7   :  { %v542_v28 = vpop.permute.xlu0 %541 }
 0xdd8   :  { %1368 = vmatmul.msk.f32.vlgmr.msrb.gmra.mxu0 %vm132_vm6, %v542_v28 }
 0xdd9   :  { %1017 = vmatpush.msrb.mxu0 %v1770_v32 }
 0xddb   :  { %1018 = vmatpush.msrb.mxu0 %v1772_v33  ;;  %v792_v29 = vpop.permute.xlu1 %791 }
 0xddd   :  { %1019 = vmatpush.msrb.mxu0 %v1776_v35 }
 0xddf   :  { %1020 = vmatpush.msrb.mxu0 %v1782_v36 }
 0xde0   :  { %1375 = vmatmul.msk.f32.vlgmr.msra.gmra.mxu0 %vm132_vm6, %v792_v29 }
 0xe55   :  { %v562_v30 = vpop.f32.mrf.mxu0 }
 0xe56   :  { %v566_v37 = vrot.slane %v562_v30, 4 }
 0xe58   :  { %v568_v38 = vadd.f32 %v566_v37, %v1755_v63 }
 0xe5a   :  { %1460 = vtanh.f32 %v568_v38  ;;  %v1369_v44 = vmul.f32 -1.442695, %v568_v38 }
 0xe5d   :  { %v812_v39 = vpop.f32.mrf.mxu0 }
 0xe5e   :  { %v816_v40 = vrot.slane %v812_v39, 6 }
 0xe60   :  { %v1461_v41 = vpop.eup %1460  ;;  %v818_v42 = vadd.f32 %v816_v40, %v1811_v7 }
 0xe61   :  { %594 = vrot.lane.b32.xlu2 %v1461_v41, %s1616_s25 }
 0xe62   :  { %1462 = vtanh.f32 %v818_v42  ;;  %v1376_v49 = vmul.f32 -1.442695, %v818_v42 }
 0xe63   :  { %1464 = vpow2.f32 %v1369_v44 }
 0xe68   :  { %v1463_v43 = vpop.eup %1462 }
 0xe69   :  { %844 = vrot.lane.b32.xlu0 %v1463_v43, %s1616_s25  ;;  %v1465_v45 = vpop.eup %1464 }
 0xe6a   :  { %v572_v46 = vadd.f32 1.0, %v1465_v45 }
 0xe6c   :  { %1466 = vrcp.f32 %v572_v46  ;;  %v584_v52 = vand.u32 2147483648, %v572_v46  ;;  %vm578_vm8 = vweird.f32 %v572_v46  ;;  %v582_v53 = vand.u32 2147483647, %v572_v46 }
 0xe6d   :  { %1468 = vpow2.f32 %v1376_v49 }
 0xe6e   :  { %v585_v56 = vor.u32 1.1754944e-38, %v584_v52  ;;  %vm583_vm10 = vcmp.eq.f32.partialorder %v582_v53, 8.507059e+37 }
 0xe72   :  { %v1467_v10 = vpop.eup %1466 }
 0xe73   :  { %v574_v47 = vmul.f32 %v1467_v10, %v572_v46  ;;  %vm579_vm1 = vweird.f32 %v1467_v10  ;;  %v1469_v54 = vpop.eup %1468 }
 0xe74   :  { %vm580_vm9 = vmor %vm578_vm8, %vm579_vm1  ;;  %v822_v57 = vadd.f32 1.0, %v1469_v54 }
 0xe75   :  { %v575_v48 = vsub.f32 1.0, %v574_v47 }
 0xe76   :  { %1470 = vrcp.f32 %v822_v57  ;;  %v834_v3 = vand.u32 2147483648, %v822_v57  ;;  %vm828_vm12 = vweird.f32 %v822_v57  ;;  %v832_v4 = vand.u32 2147483647, %v822_v57 }
 0xe77   :  { %v576_v50 = vmul.f32 %v1467_v10, %v575_v48 }
 0xe78   :  { %v835_v6 = vor.u32 1.1754944e-38, %v834_v3  ;;  %vm833_vm14 = vcmp.eq.f32.partialorder %v832_v4, 8.507059e+37 }
 0xe79   :  { %v577_v51 = vadd.f32 %v1467_v10, %v576_v50 }
 0xe7b   :  { %v581_v55 = vsel %vm580_vm9, %v1467_v10, %v577_v51 }
 0xe7c   :  { %v586_v59 = vsel %vm583_vm10, %v585_v56, %v581_v55  ;;  %v1471_v61 = vpop.eup %1470 }
 0xe7d   :  { %v824_v62 = vmul.f32 %v1471_v61, %v822_v57  ;;  %vm829_vm11 = vweird.f32 %v1471_v61  ;;  %v592_v8 = vmul.f32 %v590_v13, %v586_v59 }
 0xe7e   :  { %vm830_vm13 = vmor %vm828_vm12, %vm829_vm11 }
 0xe7f   :  { %v825_v0 = vsub.f32 1.0, %v824_v62 }
 0xe81   :  { %v826_v1 = vmul.f32 %v1471_v61, %v825_v0 }
 0xe83   :  { %v827_v2 = vadd.f32 %v1471_v61, %v826_v1 }
 0xe85   :  { %v831_v5 = vsel %vm830_vm13, %v1471_v61, %v827_v2 }
 0xe86   :  { %v836_v11 = vsel %vm833_vm14, %v835_v6, %v831_v5 }
 0xe87   :  { %v842_v18 = vmul.f32 %v840_v16, %v836_v11 }
 0xebb   :  { %v595_v58 = vpop.permute.xlu2 %594 }
 0xebc   :  { %v597_v60 = vmul.f32 %v595_v58, %v586_v59 }
 0xebe   :  { %599 = vrot.lane.b32.xlu1 %v597_v60, %s1617_s3 }
 0xedb   :  { %v845_v9 = vpop.permute.xlu0 %844 }
 0xedc   :  { %v847_v12 = vmul.f32 %v845_v9, %v836_v11 }
 0xede   :  { %849 = vrot.lane.b32.xlu2 %v847_v12, %s1617_s3 }
 0xf30   :  { %v600_v14 = vpop.permute.xlu1 %599 }
 0xf31   :  { %v1845_v15 = vadd.f32 %v600_v14, %v592_v8 }
 0xf33   :  { %1472 = vtanh.f32 %v1845_v15 }
 0xf38   :  { %v850_v19 = vpop.permute.xlu2 %849 }
 0xf39   :  { %v1473_v20 = vpop.eup %1472  ;;  %v852_v22 = vadd.f32 %v850_v19, %v842_v18 }
 0xf3a   :  { %605 = vrot.lane.b32.xlu0 %v1473_v20, %s1616_s25 }
 0xf3b   :  { %1474 = vtanh.f32 %v852_v22  ;;  %v910_v55 = vrot.slane %v852_v22, 6 }
 0xf41   :  { %v1475_v23 = vpop.eup %1474 }
 0xf42   :  { %855 = vrot.lane.b32.xlu1 %v1475_v23, %s1616_s25  ;;  %v660_v23 = vrot.slane %v1845_v15, 6 }
 0xfac   :  { %v606_v25 = vpop.permute.xlu0 %605 }
 0xfad   :  { %v608_v17 = vmul.f32 %v606_v25, %v586_v59 }
 0xfaf   :  { %v610_v27 = vrot.slane %v608_v17, 4  ;;  %v1855_v28 = vsel %vm101_vm0, %v684_v26, %v608_v17 }
 0xfb1   :  { %611 = vrot.lane.b32.xlu2 %v610_v27, %s1617_s3 }
 0xfb4   :  { %v856_v21 = vpop.permute.xlu1 %855 }
 0xfb5   :  { %v858_v29 = vmul.f32 %v856_v21, %v836_v11 }
 0xfb7   :  { %v860_v30 = vrot.slane %v858_v29, 2 }
 0xfb9   :  { %861 = vrot.lane.b32.xlu0 %v860_v30, %s1617_s3 }
0x100b   :  { %v612_v37 = vpop.permute.xlu2 %611 }
0x100c   :  { %1370 = vmatmul.msk.f32.vlgmr.msra.gmra.mxu1 %vm132_vm6, %v612_v37 }
0x100d   :  { %1083 = vmatpush.msra.mxu1 %v1770_v32 }
0x100f   :  { %1084 = vmatpush.msra.mxu1 %v1772_v33 }
0x1011   :  { %1085 = vmatpush.msra.mxu1 %v1776_v35 }
0x1013   :  { %1086 = vmatpush.msra.mxu1 %v1782_v36 }
0x102b   :  { %v862_v31 = vpop.permute.xlu0 %861 }
0x102c   :  { %1377 = vmatmul.msk.f32.vlgmr.msrb.gmra.mxu1 %vm132_vm6, %v862_v31 }
0x1089   :  { %v632_v24 = vpop.f32.mrf.mxu1 }
0x108a   :  { %v636_v47 = vrot.slane %v632_v24, 2 }
0x108c   :  { %v638_v50 = vadd.f32 %v636_v47, %v1755_v63 }
0x108e   :  { %v1371_v63 = vmul.f32 -1.442695, %v638_v50 }
0x10a9   :  { %v882_v38 = vpop.f32.mrf.mxu1 }
0x10aa   :  { %v886_v39 = vrot.slane %v882_v38, 4 }
0x10ac   :  { %v888_v40 = vadd.f32 %v886_v39, %v1811_v7 }
0x10ae   :  { %1476 = vtanh.f32 %v888_v40  ;;  %v1378_v42 = vmul.f32 -1.442695, %v888_v40 }
0x10b0   :  { %1478 = vpow2.f32 %v1378_v42 }
0x10b4   :  { %v1477_v41 = vpop.eup %1476 }
0x10b5   :  { %914 = vrot.lane.b32.xlu1 %v1477_v41, %s1616_s25 }
0x10b6   :  { %v1479_v32 = vpop.eup %1478 }
0x10b7   :  { %v892_v33 = vadd.f32 1.0, %v1479_v32 }
0x10b9   :  { %1480 = vrcp.f32 %v892_v33  ;;  %v904_v46 = vand.u32 2147483648, %v892_v33  ;;  %vm898_vm15 = vweird.f32 %v892_v33  ;;  %v902_v10 = vand.u32 2147483647, %v892_v33 }
0x10ba   :  { %1482 = vtanh.f32 %v638_v50 }
0x10bb   :  { %v905_v49 = vor.u32 1.1754944e-38, %v904_v46  ;;  %vm903_vm3 = vcmp.eq.f32.partialorder %v902_v10, 8.507059e+37 }
0x10bf   :  { %v1481_v35 = vpop.eup %1480 }
0x10c0   :  { %v894_v43 = vmul.f32 %v1481_v35, %v892_v33  ;;  %vm899_vm0 = vweird.f32 %v1481_v35  ;;  %v1483_v54 = vpop.eup %1482 }
0x10c1   :  { %vm900_vm2 = vmor %vm898_vm15, %vm899_vm0 }
0x10c2   :  { %v895_v36 = vsub.f32 1.0, %v894_v43 }
0x10c4   :  { %v896_v44 = vmul.f32 %v1481_v35, %v895_v36 }
0x10c6   :  { %v897_v45 = vadd.f32 %v1481_v35, %v896_v44 }
0x10c8   :  { %v901_v48 = vsel %vm900_vm2, %v1481_v35, %v897_v45 }
0x10c9   :  { %v906_v52 = vsel %vm903_vm3, %v905_v49, %v901_v48 }
0x10ca   :  { %v912_v56 = vmul.f32 %v910_v55, %v906_v52 }
0x1127   :  { %v915_v51 = vpop.permute.xlu1 %914 }
0x1128   :  { %v917_v53 = vmul.f32 %v915_v51, %v906_v52 }
0x112a   :  { %919 = vrot.lane.b32.xlu2 %v917_v53, %s1617_s3 }
0x1132   :  { %664 = vrot.lane.b32.xlu2 %v1483_v54, %s1616_s25 }
0x1184   :  { %v920_v57 = vpop.permute.xlu2 %919 }
0x1185   :  { %v1870_v58 = vadd.f32 %v920_v57, %v912_v56 }
0x1187   :  { %1484 = vtanh.f32 %v1870_v58  ;;  %v980_v45 = vrot.slane %v1870_v58, 6 }
0x1188   :  { %1486 = vpow2.f32 %v1371_v63 }
0x118c   :  { %v665_v8 = vpop.permute.xlu2 %664 }
0x118d   :  { %v1485_v59 = vpop.eup %1484 }
0x118e   :  { %925 = vrot.lane.b32.xlu0 %v1485_v59, %s1616_s25  ;;  %v1487_v60 = vpop.eup %1486 }
0x118f   :  { %v642_v61 = vadd.f32 1.0, %v1487_v60 }
0x1191   :  { %1488 = vrcp.f32 %v642_v61  ;;  %v654_v9 = vand.u32 2147483648, %v642_v61  ;;  %vm648_vm5 = vweird.f32 %v642_v61  ;;  %v652_v11 = vand.u32 2147483647, %v642_v61 }
0x1193   :  { %v655_v13 = vor.u32 1.1754944e-38, %v654_v9  ;;  %vm653_vm8 = vcmp.eq.f32.partialorder %v652_v11, 8.507059e+37 }
0x1197   :  { %v1489_v62 = vpop.eup %1488 }
0x1198   :  { %v644_v0 = vmul.f32 %v1489_v62, %v642_v61  ;;  %vm649_vm4 = vweird.f32 %v1489_v62 }
0x1199   :  { %vm650_vm1 = vmor %vm648_vm5, %vm649_vm4 }
0x119a   :  { %v645_v1 = vsub.f32 1.0, %v644_v0 }
0x119c   :  { %v646_v2 = vmul.f32 %v1489_v62, %v645_v1 }
0x119e   :  { %v647_v5 = vadd.f32 %v1489_v62, %v646_v2 }
0x11a0   :  { %v651_v12 = vsel %vm650_vm1, %v1489_v62, %v647_v5 }
0x11a1   :  { %v656_v14 = vsel %vm653_vm8, %v655_v13, %v651_v12 }
0x11a2   :  { %v667_v16 = vmul.f32 %v665_v8, %v656_v14  ;;  %v662_v17 = vmul.f32 %v660_v23, %v656_v14 }
0x1200   :  { %v926_v3 = vpop.permute.xlu0 %925 }
0x1201   :  { %v928_v4 = vmul.f32 %v926_v3, %v906_v52 }
0x1203   :  { %v930_v6 = vrot.slane %v928_v4, 4 }
0x1205   :  { %931 = vrot.lane.b32.xlu1 %v930_v6, %s1617_s3 }
0x120d   :  { %669 = vrot.lane.b32.xlu1 %v667_v16, %s1617_s3 }
0x1277   :  { %v932_v18 = vpop.permute.xlu1 %931 }
0x1278   :  { %1379 = vmatmul.msk.f32.vlgmr.msrb.gmra.mxu3 %vm132_vm6, %v932_v18 }
0x127f   :  { %v670_v25 = vpop.permute.xlu1 %669 }
0x1280   :  { %v672_v26 = vadd.f32 %v670_v25, %v662_v17 }
0x12fb   :  { %v952_v19 = vpop.f32.mrf.mxu3 }
0x12fc   :  { %v956_v20 = vrot.slane %v952_v19, 2 }
0x12fe   :  { %v958_v22 = vadd.f32 %v956_v20, %v1811_v7 }
0x1300   :  { %1490 = vtanh.f32 %v958_v22  ;;  %v1380_v29 = vmul.f32 -1.442695, %v958_v22 }
0x1301   :  { %1492 = vtanh.f32 %v672_v26 }
0x1302   :  { %1494 = vpow2.f32 %v1380_v29 }
0x1306   :  { %v1491_v27 = vpop.eup %1490 }
0x1307   :  { %984 = vrot.lane.b32.xlu0 %v1491_v27, %s1616_s25  ;;  %v1493_v21 = vpop.eup %1492 }
0x1308   :  { %v1495_v30 = vpop.eup %1494 }
0x1309   :  { %v962_v37 = vadd.f32 1.0, %v1495_v30 }
0x130b   :  { %1496 = vrcp.f32 %v962_v37  ;;  %v974_v39 = vand.u32 2147483648, %v962_v37  ;;  %vm968_vm10 = vweird.f32 %v962_v37  ;;  %v972_v40 = vand.u32 2147483647, %v962_v37 }
0x130d   :  { %v975_v42 = vor.u32 1.1754944e-38, %v974_v39  ;;  %vm973_vm12 = vcmp.eq.f32.partialorder %v972_v40, 8.507059e+37 }
0x130f   :  { %675 = vrot.lane.b32.xlu0 %v1493_v21, %s1616_s25 }
0x1311   :  { %v1497_v31 = vpop.eup %1496 }
0x1312   :  { %v964_v7 = vmul.f32 %v1497_v31, %v962_v37  ;;  %vm969_vm9 = vweird.f32 %v1497_v31 }
0x1313   :  { %vm970_vm11 = vmor %vm968_vm10, %vm969_vm9 }
0x1314   :  { %v965_v24 = vsub.f32 1.0, %v964_v7 }
0x1316   :  { %v966_v15 = vmul.f32 %v1497_v31, %v965_v24 }
0x1318   :  { %v967_v38 = vadd.f32 %v1497_v31, %v966_v15 }
0x131a   :  { %v971_v41 = vsel %vm970_vm11, %v1497_v31, %v967_v38 }
0x131b   :  { %v976_v33 = vsel %vm973_vm12, %v975_v42, %v971_v41 }
0x131c   :  { %v982_v46 = vmul.f32 %v980_v45, %v976_v33 }
0x1379   :  { %v985_v32 = vpop.permute.xlu0 %984 }
0x137a   :  { %v987_v35 = vmul.f32 %v985_v32, %v976_v33 }
0x137c   :  { %989 = vrot.lane.b32.xlu2 %v987_v35, %s1617_s3 }
0x1381   :  { %v676_v43 = vpop.permute.xlu0 %675 }
0x1382   :  { %v678_v36 = vmul.f32 %v676_v43, %v656_v14 }
0x1384   :  { %v686_v44 = vsel %vm682_vm7, %v1855_v28, %v678_v36 }
0x1385   :  { %699 = vrot.lane.b32.xlu2 %v686_v44, %s1617_s3 }
0x13d6   :  { %v990_v10 = vpop.permute.xlu2 %989 }
0x13d7   :  { %v992_v47 = vadd.f32 %v990_v10, %v982_v46 }
0x13d9   :  { %1498 = vtanh.f32 %v992_v47  ;;  %v1047_v11 = vrot.slane %v992_v47, 6 }
0x13df   :  { %v1499_v48 = vpop.eup %1498  ;;  %v700_v49 = vpop.permute.xlu2 %699 }
0x13e0   :  { %995 = vrot.lane.b32.xlu1 %v1499_v48, %s1616_s25  ;;  %1373 = vmatmul.msk.f32.gmra.mxu2 %vm132_vm6, %v700_v49 }
0x1452   :  { %v996_v50 = vpop.permute.xlu1 %995 }
0x1453   :  { %v998_v51 = vmul.f32 %v996_v50, %v976_v33 }
0x1455   :  { %v1000_v52 = vrot.slane %v998_v51, 6 }
0x1457   :  { %1001 = vrot.lane.b32.xlu0 %v1000_v52, %s1617_s3 }
0x1463   :  { %v725_v53 = vpop.f32.mrf.mxu2 }
0x1464   :  { %v1891_v54 = vadd.f32 %v1807_v34, %v725_v53 }
0x14c9   :  { %v1002_v28 = vpop.permute.xlu0 %1001 }
0x14ca   :  { %1381 = vmatmul.msk.f32.vlgmr.msrb.gmra.mxu0 %vm132_vm6, %v1002_v28 }
0x1547   :  { %v1022_v55 = vpop.f32.mrf.mxu0 }
0x1548   :  { %v1025_v56 = vadd.f32 %v1022_v55, %v1891_v54 }
0x154a   :  { %1500 = vtanh.f32 %v1025_v56  ;;  %v1382_v58 = vmul.f32 -1.442695, %v1025_v56 }
0x154c   :  { %1502 = vpow2.f32 %v1382_v58 }
0x1550   :  { %v1501_v57 = vpop.eup %1500 }
0x1551   :  { %1051 = vrot.lane.b32.xlu1 %v1501_v57, %s1616_s25 }
0x1552   :  { %v1503_v59 = vpop.eup %1502 }
0x1553   :  { %v1029_v63 = vadd.f32 1.0, %v1503_v59 }
0x1555   :  { %1504 = vrcp.f32 %v1029_v63  ;;  %v1041_v34 = vand.u32 2147483648, %v1029_v63  ;;  %vm1035_vm13 = vweird.f32 %v1029_v63  ;;  %v1039_v2 = vand.u32 2147483647, %v1029_v63 }
0x1557   :  { %v1042_v4 = vor.u32 1.1754944e-38, %v1041_v34  ;;  %vm1040_vm0 = vcmp.eq.f32.partialorder %v1039_v2, 8.507059e+37 }
0x155b   :  { %v1505_v60 = vpop.eup %1504 }
0x155c   :  { %v1031_v61 = vmul.f32 %v1505_v60, %v1029_v63  ;;  %vm1036_vm7 = vweird.f32 %v1505_v60 }
0x155d   :  { %vm1037_vm14 = vmor %vm1035_vm13, %vm1036_vm7 }
0x155e   :  { %v1032_v62 = vsub.f32 1.0, %v1031_v61 }
0x1560   :  { %v1033_v0 = vmul.f32 %v1505_v60, %v1032_v62 }
0x1562   :  { %v1034_v1 = vadd.f32 %v1505_v60, %v1033_v0 }
0x1564   :  { %v1038_v3 = vsel %vm1037_vm14, %v1505_v60, %v1034_v1  ;;  %vm1346_vm14 = vcmask 1024  }
0x1565   :  { %v1043_v6 = vsel %vm1040_vm0, %v1042_v4, %v1038_v3 }
0x1566   :  { %v1049_v12 = vmul.f32 %v1047_v11, %v1043_v6 }
0x15c3   :  { %v1052_v5 = vpop.permute.xlu1 %1051 }
0x15c4   :  { %v1054_v9 = vmul.f32 %v1052_v5, %v1043_v6 }
0x15c6   :  { %1056 = vrot.lane.b32.xlu2 %v1054_v9, %s1617_s3 }
0x1620   :  { %v1057_v13 = vpop.permute.xlu2 %1056 }
0x1621   :  { %v1059_v8 = vadd.f32 %v1057_v13, %v1049_v12 }
0x1623   :  { %1506 = vtanh.f32 %v1059_v8  ;;  %v1116_v42 = vrot.slane %v1059_v8, 6 }
0x1629   :  { %v1507_v14 = vpop.eup %1506 }
0x162a   :  { %1062 = vrot.lane.b32.xlu0 %v1507_v14, %s1616_s25 }
0x169c   :  { %v1063_v16 = vpop.permute.xlu0 %1062 }
0x169d   :  { %v1065_v18 = vmul.f32 %v1063_v16, %v1043_v6 }
0x169f   :  { %1067 = vrot.lane.b32.xlu1 %v1065_v18, %s1617_s3 }
0x1711   :  { %v1068_v19 = vpop.permute.xlu1 %1067 }
0x1712   :  { %1383 = vmatmul.msk.f32.vlgmr.msra.gmra.mxu1 %vm132_vm6, %v1068_v19 }
0x178f   :  { %v1088_v20 = vpop.f32.mrf.mxu1 }
0x1790   :  { %v1092_v22 = vrot.slane %v1088_v20, 6 }
0x1792   :  { %v1094_v23 = vadd.f32 %v1092_v22, %v1891_v54 }
0x1794   :  { %1508 = vtanh.f32 %v1094_v23  ;;  %v1384_v17 = vmul.f32 -1.442695, %v1094_v23 }
0x1796   :  { %1510 = vpow2.f32 %v1384_v17 }
0x179a   :  { %v1509_v25 = vpop.eup %1508 }
0x179b   :  { %1120 = vrot.lane.b32.xlu2 %v1509_v25, %s1616_s25 }
0x179c   :  { %v1511_v26 = vpop.eup %1510 }
0x179d   :  { %v1098_v27 = vadd.f32 1.0, %v1511_v26 }
0x179f   :  { %1512 = vrcp.f32 %v1098_v27  ;;  %v1110_v7 = vand.u32 2147483648, %v1098_v27  ;;  %vm1104_vm2 = vweird.f32 %v1098_v27  ;;  %v1108_v24 = vand.u32 2147483647, %v1098_v27 }
0x17a1   :  { %v1111_v38 = vor.u32 1.1754944e-38, %v1110_v7  ;;  %vm1109_vm4 = vcmp.eq.f32.partialorder %v1108_v24, 8.507059e+37 }
0x17a5   :  { %v1513_v21 = vpop.eup %1512 }
0x17a6   :  { %v1100_v29 = vmul.f32 %v1513_v21, %v1098_v27  ;;  %vm1105_vm15 = vweird.f32 %v1513_v21 }
0x17a7   :  { %vm1106_vm3 = vmor %vm1104_vm2, %vm1105_vm15 }
0x17a8   :  { %v1101_v30 = vsub.f32 1.0, %v1100_v29 }
0x17aa   :  { %v1102_v37 = vmul.f32 %v1513_v21, %v1101_v30 }
0x17ac   :  { %v1103_v31 = vadd.f32 %v1513_v21, %v1102_v37 }
0x17ae   :  { %v1107_v15 = vsel %vm1106_vm3, %v1513_v21, %v1103_v31 }
0x17af   :  { %v1112_v40 = vsel %vm1109_vm4, %v1111_v38, %v1107_v15 }
0x17b0   :  { %v1118_v32 = vmul.f32 %v1116_v42, %v1112_v40  ;;  %v1275_v42 = vld [vmem:[#allocation7] sm:$0xff] }
0x17f5   :  { %v1121_v39 = vpop.permute.xlu2 %1120 }
0x17f6   :  { %v1123_v41 = vmul.f32 %v1121_v39, %v1112_v40  ;;  %v1278_v39 = vld [vmem:[#allocation7 + $0x18] sm:$0xff] }
0x17f7   :  { %1301 = vmatpush.msra.mxu0 %v1278_v39 }
0x17f8   :  { %1125 = vrot.lane.b32.xlu0 %v1123_v41, %s1617_s3  ;;  %v1276_v41 = vld [vmem:[#allocation7 + $0x8] sm:$0xff] }
0x186a   :  { %v1126_v33 = vpop.permute.xlu0 %1125 }
0x186b   :  { %v1128_v35 = vadd.f32 %v1126_v33, %v1118_v32 }
0x186d   :  { %1514 = vtanh.f32 %v1128_v35  ;;  %v1186_v1 = vrot.slane %v1128_v35, 6 }
0x1873   :  { %v1515_v43 = vpop.eup %1514 }
0x1874   :  { %1131 = vrot.lane.b32.xlu1 %v1515_v43, %s1616_s25 }
0x18e6   :  { %v1132_v36 = vpop.permute.xlu1 %1131 }
0x18e7   :  { %v1134_v44 = vmul.f32 %v1132_v36, %v1112_v40  ;;  %v1277_v40 = vld [vmem:[#allocation7 + $0x10] sm:$0xff] }
0x18e8   :  { %1302 = vmatpush.msra.mxu0 %v1277_v40  ;;  %v1318_v36 = vld [vmem:[%s1945_s9 + $0x18] sm:$0xff] }
0x18e9   :  { %v1136_v45 = vrot.slane %v1134_v44, 2  ;;  %1338 = vmatpush.msrb.mxu1 %v1318_v36  ;;  %v1317_v44 = vld [vmem:[%s1945_s9 + $0x10] sm:$0xff] }
0x18ea   :  { %1303 = vmatpush.msra.mxu0 %v1276_v41 }
0x18eb   :  { %1137 = vrot.lane.b32.xlu2 %v1136_v45, %s1617_s3  ;;  %1339 = vmatpush.msrb.mxu1 %v1317_v44  ;;  %v1316_v45 = vld [vmem:[%s1945_s9 + $0x8] sm:$0xff] }
0x18ec   :  { %1304 = vmatpush.msra.mxu0 %v1275_v42 }
0x18ed   :  { %1340 = vmatpush.msrb.mxu1 %v1316_v45 }
0x1945   :  { %v1138_v46 = vpop.permute.xlu2 %1137 }
0x1946   :  { %1385 = vmatmul.msk.f32.vlgmr.msrb.gmra.mxu2 %vm132_vm6, %v1138_v46  ;;  %v1315_v46 = vld [vmem:[%s1945_s9] sm:$0xff] }
0x1947   :  { %1341 = vmatpush.msrb.mxu1 %v1315_v46 }
0x19c9   :  { %v1158_v10 = vpop.f32.mrf.mxu2 }
0x19ca   :  { %v1162_v47 = vrot.slane %v1158_v10, 4  ;;  %v1402_v10 = vld [vmem:[%s1944_s8] ss:$0 sm:$0xff] }
0x19cc   :  { %v1164_v48 = vadd.f32 %v1162_v47, %v1891_v54 }
0x19ce   :  { %1516 = vtanh.f32 %v1164_v48  ;;  %v1386_v50 = vmul.f32 -1.442695, %v1164_v48 }
0x19d0   :  { %1518 = vpow2.f32 %v1386_v50 }
0x19d4   :  { %v1517_v49 = vpop.eup %1516 }
0x19d5   :  { %1190 = vrot.lane.b32.xlu0 %v1517_v49, %s1616_s25 }
0x19d6   :  { %v1519_v51 = vpop.eup %1518 }
0x19d7   :  { %v1168_v52 = vadd.f32 1.0, %v1519_v51 }
0x19d9   :  { %1520 = vrcp.f32 %v1168_v52  ;;  %v1180_v58 = vand.u32 2147483648, %v1168_v52  ;;  %vm1174_vm1 = vweird.f32 %v1168_v52  ;;  %v1178_v59 = vand.u32 2147483647, %v1168_v52 }
0x19db   :  { %v1181_v60 = vor.u32 1.1754944e-38, %v1180_v58  ;;  %vm1179_vm9 = vcmp.eq.f32.partialorder %v1178_v59, 8.507059e+37 }
0x19df   :  { %v1521_v28 = vpop.eup %1520 }
0x19e0   :  { %v1170_v53 = vmul.f32 %v1521_v28, %v1168_v52  ;;  %vm1175_vm5 = vweird.f32 %v1521_v28 }
0x19e1   :  { %vm1176_vm8 = vmor %vm1174_vm1, %vm1175_vm5 }
0x19e2   :  { %v1171_v55 = vsub.f32 1.0, %v1170_v53  ;;  %v1403_v53 = vld [vmem:[#allocation2] ss:$0 sm:$0xff] }
0x19e4   :  { %v1172_v56 = vmul.f32 %v1521_v28, %v1171_v55 }
0x19e6   :  { %v1173_v57 = vadd.f32 %v1521_v28, %v1172_v56 }
0x19e8   :  { %v1177_v63 = vsel %vm1176_vm8, %v1521_v28, %v1173_v57 }
0x19e9   :  { %v1182_v62 = vsel %vm1179_vm9, %v1181_v60, %v1177_v63 }
0x19ea   :  { %v1188_v34 = vmul.f32 %v1186_v1, %v1182_v62 }
0x1a47   :  { %v1191_v61 = vpop.permute.xlu0 %1190 }
0x1a48   :  { %v1193_v0 = vmul.f32 %v1191_v61, %v1182_v62 }
0x1a4a   :  { %1195 = vrot.lane.b32.xlu1 %v1193_v0, %s1617_s3 }
0x1abc   :  { %v1196_v2 = vpop.permute.xlu1 %1195 }
0x1abd   :  { %v1198_v3 = vadd.f32 %v1196_v2, %v1188_v34 }
0x1abf   :  { %1522 = vtanh.f32 %v1198_v3  ;;  %v1256_v31 = vrot.slane %v1198_v3, 6 }
0x1ac5   :  { %v1523_v4 = vpop.eup %1522 }
0x1ac6   :  { %1201 = vrot.lane.b32.xlu2 %v1523_v4, %s1616_s25 }
0x1b20   :  { %v1202_v5 = vpop.permute.xlu2 %1201 }
0x1b21   :  { %v1204_v6 = vmul.f32 %v1202_v5, %v1182_v62 }
0x1b23   :  { %v1206_v9 = vrot.slane %v1204_v6, 4 }
0x1b25   :  { %1207 = vrot.lane.b32.xlu0 %v1206_v9, %s1617_s3 }
0x1b97   :  { %v1208_v11 = vpop.permute.xlu0 %1207 }
0x1b98   :  { %1387 = vmatmul.msk.f32.vlgmr.msra.gmra.mxu3 %vm132_vm6, %v1208_v11 }
0x1c1b   :  { %v1228_v12 = vpop.f32.mrf.mxu3 }
0x1c1c   :  { %v1232_v13 = vrot.slane %v1228_v12, 2 }
0x1c1e   :  { %v1234_v8 = vadd.f32 %v1232_v13, %v1891_v54 }
0x1c20   :  { %1524 = vtanh.f32 %v1234_v8  ;;  %v1388_v16 = vmul.f32 -1.442695, %v1234_v8 }
0x1c22   :  { %1526 = vpow2.f32 %v1388_v16 }
0x1c26   :  { %v1525_v14 = vpop.eup %1524 }
0x1c27   :  { %1260 = vrot.lane.b32.xlu1 %v1525_v14, %s1616_s25 }
0x1c28   :  { %v1527_v18 = vpop.eup %1526 }
0x1c29   :  { %v1238_v19 = vadd.f32 1.0, %v1527_v18 }
0x1c2b   :  { %1528 = vrcp.f32 %v1238_v19  ;;  %v1250_v26 = vand.u32 2147483648, %v1238_v19  ;;  %vm1244_vm11 = vweird.f32 %v1238_v19  ;;  %v1248_v27 = vand.u32 2147483647, %v1238_v19 }
0x1c2d   :  { %v1251_v21 = vor.u32 1.1754944e-38, %v1250_v26  ;;  %vm1249_vm7 = vcmp.eq.f32.partialorder %v1248_v27, 8.507059e+37 }
0x1c31   :  { %v1529_v20 = vpop.eup %1528 }
0x1c32   :  { %v1240_v22 = vmul.f32 %v1529_v20, %v1238_v19  ;;  %vm1245_vm10 = vweird.f32 %v1529_v20 }
0x1c33   :  { %vm1246_vm12 = vmor %vm1244_vm11, %vm1245_vm10 }
0x1c34   :  { %v1241_v23 = vsub.f32 1.0, %v1240_v22 }
0x1c36   :  { %v1242_v25 = vmul.f32 %v1529_v20, %v1241_v23 }
0x1c38   :  { %v1243_v17 = vadd.f32 %v1529_v20, %v1242_v25 }
0x1c3a   :  { %v1247_v54 = vsel %vm1246_vm12, %v1529_v20, %v1243_v17 }
0x1c3b   :  { %v1252_v30 = vsel %vm1249_vm7, %v1251_v21, %v1247_v54 }
0x1c3c   :  { %v1258_v7 = vmul.f32 %v1256_v31, %v1252_v30 }
0x1c99   :  { %v1261_v29 = vpop.permute.xlu1 %1260 }
0x1c9a   :  { %v1263_v37 = vmul.f32 %v1261_v29, %v1252_v30 }
0x1c9c   :  { %1265 = vrot.lane.b32.xlu2 %v1263_v37, %s1617_s3 }
0x1cf6   :  { %v1266_v24 = vpop.permute.xlu2 %1265 }
0x1cf7   :  { %v1268_v15 = vadd.f32 %v1266_v24, %v1258_v7 }
0x1cf9   :  { %1530 = vtanh.f32 %v1268_v15 }
0x1cff   :  { %v1531_v38 = vpop.eup %1530 }
0x1d00   :  { %1271 = vrot.lane.b32.xlu0 %v1531_v38, %s1616_s25 }
0x1d72   :  { %v1272_v32 = vpop.permute.xlu0 %1271 }
0x1d73   :  { %v1274_v33 = vmul.f32 %v1272_v32, %v1252_v30 }
0x1d75   :  { %v1284_v35 = vrot.slane %v1274_v33, 6 }
0x1d77   :  { %1285 = vrot.lane.b32.xlu1 %v1284_v35, %s1617_s3 }
0x1de9   :  { %v1286_v43 = vpop.permute.xlu1 %1285 }
0x1dea   :  { %1389 = vmatmul.msk.f32.vlgmr.msra.gmra.mxu0 %vm132_vm6, %v1286_v43 }
0x1e67   :  { %v1306_v47 = vpop.f32.mrf.mxu0 }
0x1e68   :  { %v1307_v48 = vadd.f32 %v1402_v10, %v1306_v47 }
0x1e6a   :  { %v1310_v49 = vmin.f32 %v1307_v48, 0.0  ;;  %vm1309_vm13 = vcmp.gt.f32.partialorder %v1307_v48, 0.0 }
0x1e6c   :  { %v1311_v50 = vmul.f32 1.442695, %v1310_v49 }
0x1e6e   :  { %1532 = vpow2.f32 %v1311_v50 }
0x1e74   :  { %v1533_v51 = vpop.eup %1532 }
0x1e75   :  { %v1390_v52 = vadd.f32 -1.0, %v1533_v51 }
0x1e77   :  { %v1314_v28 = vsel %vm1309_vm13, %v1307_v48, %v1390_v52 }
0x1e78   :  { %1391 = vmatmul.msk.f32.vlgmr.msrb.gmra.mxu1 %vm132_vm6, %v1314_v28 }
0x1ef5   :  { %v1343_v55 = vpop.f32.mrf.mxu1 }
0x1ef6   :  { %v1344_v56 = vadd.f32 %v1403_v53, %v1343_v55 }
0x1ef8   :  { %1347 = vst.msk [vmem:[%s1947_s11] sm:$0x3] %vm1346_vm14, %v1344_v56 }
0x1ef9   :  { %1352 = vsyncpa [#allocation4], 1 }
0x1efa   :  { %1353 = vsyncpa [#allocation6], 1 }

</bundles_post_ra>
